<compile_context>
chip_gen: v7x
topology: tpu7x:2x2x1
jax: 0.10.0
libtpu: 0.0.40
codegen_flags: <defaults>
</compile_context>

<pallas_src>
import jax
import jax.numpy as jnp
from jax.experimental import pallas as pl
from jax.experimental.pallas import tpu as pltpu

_LANE = 128
_NEG = -1e30  # padded output-logit bias: never wins the max; exp underflows to 0


def _round_up(n, m):
    return ((n + m - 1) // m) * m


def _make_mlp_kernel(num_layers):
    """Kernel factory. num_layers = number of Linear layers (hidden + output).

    refs layout: (x, w0, b0, w1, b1, ..., w_last, b_last, out)
      hidden_i : h = relu(h @ Wi + bi)   (dropout == identity in eval mode)
      output   : logits = h @ Wo + bo ; out = log_softmax(logits, axis=-1)
    x / W are bf16 (MXU operands), accumulation + elementwise are f32.
    """

    def kernel(*refs):
        x_ref = refs[0]
        out_ref = refs[-1]
        h = x_ref[...]                       # bf16 [bt, in_pad]
        r = 1
        logits = None
        for layer in range(num_layers):
            w_ref, b_ref = refs[r], refs[r + 1]
            r += 2
            # bf16 operands, f32 accumulate on the MXU; bias add in f32 (VPU).
            z = jnp.dot(h, w_ref[...], preferred_element_type=jnp.float32) + b_ref[...]
            if layer < num_layers - 1:
                # hidden layer: ReLU in f32, then dropout == identity (eval),
                # cast back to bf16 for the next MXU pass.
                h = jnp.maximum(z, 0.0).astype(h.dtype)
            else:
                logits = z
        # log_softmax along the feature axis (dim=1), numerically stable, f32.
        m = jnp.max(logits, axis=-1, keepdims=True)
        shifted = logits - m
        lse = jnp.log(jnp.sum(jnp.exp(shifted), axis=-1, keepdims=True))
        out_ref[...] = (shifted - lse).astype(out_ref.dtype)

    return kernel


def mynetwork_forward(x, weights, biases, *, batch_tile=256):
    """Runs the fused MLP Pallas kernel.

    x:       [B, input_size] float32
    weights: list of [in, out] float32 (transposed from PyTorch's [out, in])
    biases:  list of [1, out]  float32
    """
    B, in_dim = x.shape
    num_layers = len(weights)
    out_dim = weights[-1].shape[1]

    # Lane-dense padding of every feature dim to a multiple of 128.
    dims = [in_dim] + [w.shape[1] for w in weights]
    dims_p = [_round_up(d, _LANE) for d in dims]

    bt = min(batch_tile, _round_up(B, 8))
    B_p = _round_up(B, bt)

    x_p = jnp.pad(x, ((0, B_p - B), (0, dims_p[0] - in_dim))).astype(jnp.bfloat16)

    ops = [x_p]
    in_specs = [pl.BlockSpec((bt, dims_p[0]), lambda i: (i, 0))]
    for li, (w, b) in enumerate(zip(weights, biases)):
        di, do = dims[li], dims[li + 1]
        ip, op = dims_p[li], dims_p[li + 1]
        w_p = jnp.pad(w, ((0, ip - di), (0, op - do))).astype(jnp.bfloat16)
        if li == num_layers - 1:
            # Padded output lanes get a huge negative bias so they never affect
            # the row max or the exp-sum of log_softmax.
            b_p = jnp.pad(b, ((0, 0), (0, op - do)), constant_values=_NEG)
        else:
            # Zero bias + zero weight columns -> relu(0) = 0 in padded lanes.
            b_p = jnp.pad(b, ((0, 0), (0, op - do)))
        b_p = b_p.astype(jnp.float32)
        ops += [w_p, b_p]
        # Constant (0, 0) index_map: block index never changes between grid
        # steps, so the pipeline emitter does not re-DMA the weights per tile.
        in_specs += [pl.BlockSpec((ip, op), lambda i: (0, 0)),
                     pl.BlockSpec((1, op), lambda i: (0, 0))]

    out_p = dims_p[-1]
    out_specs = pl.BlockSpec((bt, out_p), lambda i: (i, 0))

    flops = 2 * B_p * sum(a * b for a, b in zip(dims_p[:-1], dims_p[1:]))
    bytes_accessed = int(sum(o.size * o.dtype.itemsize for o in ops)
                         + B_p * out_p * 4)
    cost = pl.CostEstimate(flops=flops,
                           transcendentals=B_p * out_p,
                           bytes_accessed=bytes_accessed)

    out = pl.pallas_call(
        _make_mlp_kernel(num_layers),
        out_shape=jax.ShapeDtypeStruct((B_p, out_p), jnp.float32),
        grid_spec=pltpu.PrefetchScalarGridSpec(
            num_scalar_prefetch=0,
            grid=(B_p // bt,),
            in_specs=in_specs,
            out_specs=out_specs,
        ),
        compiler_params=pltpu.CompilerParams(
            dimension_semantics=("parallel",)),
        cost_estimate=cost,
    )(*ops)

    # Strip batch / lane padding outside the kernel (lane-dense store inside).
    return out[:B, :out_dim]


def init_params(key, input_size, hidden_layers, output_size):
    """Deterministic init mirroring nn.Linear shapes (stored as [in, out])."""
    sizes = [input_size] + list(hidden_layers) + [output_size]
    n = len(sizes) - 1
    keys = jax.random.split(key, 2 * n)
    weights, biases = [], []
    for i, (fan_in, fan_out) in enumerate(zip(sizes[:-1], sizes[1:])):
        bound = 1.0 / (fan_in ** 0.5)
        w = jax.random.uniform(keys[2 * i], (fan_in, fan_out),
                               jnp.float32, -bound, bound)
        b = jax.random.uniform(keys[2 * i + 1], (1, fan_out),
                               jnp.float32, -bound, bound)
        weights.append(w)
        biases.append(b)
    return weights, biases


def reference_forward_f32(x, weights, biases):
    """Pure-f32 JAX reference of the PyTorch forward (eval mode)."""
    h = x
    for w, b in zip(weights[:-1], biases[:-1]):
        h = jnp.maximum(h @ w + b, 0.0)
    logits = h @ weights[-1] + biases[-1]
    return jax.nn.log_softmax(logits, axis=1)


def reference_forward_bf16(x, weights, biases):
    """Reference matching the kernel's bf16-operand / f32-accumulate arithmetic."""
    h = x.astype(jnp.bfloat16)
    logits = None
    for i, (w, b) in enumerate(zip(weights, biases)):
        z = jnp.dot(h, w.astype(jnp.bfloat16),
                    preferred_element_type=jnp.float32) + b
        if i < len(weights) - 1:
            h = jnp.maximum(z, 0.0).astype(jnp.bfloat16)
        else:
            logits = z
    return jax.nn.log_softmax(logits, axis=1)


if __name__ == "__main__":
    # Shapes consistent with MyNetwork(input_size, output_size, hidden_layers).
    INPUT_SIZE = 32
    HIDDEN_LAYERS = [64, 32]
    OUTPUT_SIZE = 10
    BATCH = 512        # large enough to amortize per-grid-step overhead
    BATCH_TILE = 256   # 2 grid steps -> both v7x TensorCores get work

    key = jax.random.PRNGKey(0)
    k_x, k_p = jax.random.split(key)
    x = jax.random.normal(k_x, (BATCH, INPUT_SIZE), jnp.float32)
    weights, biases = init_params(k_p, INPUT_SIZE, HIDDEN_LAYERS, OUTPUT_SIZE)

    out = mynetwork_forward(x, weights, biases, batch_tile=BATCH_TILE)
    out = jax.block_until_ready(out)
    assert out.shape == (BATCH, OUTPUT_SIZE)

    ref_bf16 = reference_forward_bf16(x, weights, biases)
    ref_f32 = reference_forward_f32(x, weights, biases)
    assert jnp.allclose(out, ref_bf16, atol=1e-4, rtol=1e-4), \
        "mismatch vs bf16-matched reference"
    assert jnp.allclose(out, ref_f32, atol=5e-2, rtol=5e-2), \
        "mismatch vs f32 reference"

    print("KERNEL_OK")
</pallas_src>

<mosaic_0001>
module attributes {stable_mosaic.version = 11 : i64} {
  func.func @kernel(%arg0: i32, %arg1: memref<256x128xbf16, #tpu.memory_space<vmem>>, %arg2: memref<128x128xbf16, #tpu.memory_space<vmem>>, %arg3: memref<1x128xf32, #tpu.memory_space<vmem>>, %arg4: memref<128x128xbf16, #tpu.memory_space<vmem>>, %arg5: memref<1x128xf32, #tpu.memory_space<vmem>>, %arg6: memref<128x128xbf16, #tpu.memory_space<vmem>>, %arg7: memref<1x128xf32, #tpu.memory_space<vmem>>, %arg8: memref<256x128xf32, #tpu.memory_space<vmem>>) attributes {dimension_semantics = [#tpu.dimension_semantics<parallel>], iteration_bounds = array<i64: 2>, scalar_prefetch = 0 : i64, scratch_operands = 0 : i64, tpu.core_type = #tpu.core_type<tc>, window_params = [{transform_indices = @transform_0, window_bounds = array<i64: 256, 128>}, {pipeline_mode = #tpu.pipeline_mode<synchronous>, transform_indices = @transform_1, window_bounds = array<i64: 128, 128>}, {pipeline_mode = #tpu.pipeline_mode<synchronous>, transform_indices = @transform_2, window_bounds = array<i64: 1, 128>}, {pipeline_mode = #tpu.pipeline_mode<synchronous>, transform_indices = @transform_3, window_bounds = array<i64: 128, 128>}, {pipeline_mode = #tpu.pipeline_mode<synchronous>, transform_indices = @transform_4, window_bounds = array<i64: 1, 128>}, {pipeline_mode = #tpu.pipeline_mode<synchronous>, transform_indices = @transform_5, window_bounds = array<i64: 128, 128>}, {pipeline_mode = #tpu.pipeline_mode<synchronous>, transform_indices = @transform_6, window_bounds = array<i64: 1, 128>}, {transform_indices = @transform_7, window_bounds = array<i64: 256, 128>}]} {
    %c0 = arith.constant 0 : index
    %c0_0 = arith.constant 0 : index
    %0 = vector.load %arg1[%c0, %c0_0] : memref<256x128xbf16, #tpu.memory_space<vmem>>, vector<256x128xbf16>
    %c0_1 = arith.constant 0 : index
    %c0_2 = arith.constant 0 : index
    %1 = vector.load %arg2[%c0_1, %c0_2] : memref<128x128xbf16, #tpu.memory_space<vmem>>, vector<128x128xbf16>
    %cst = arith.constant dense<0.000000e+00> : vector<256x128xf32>
    %2 = tpu.matmul %0, %1, %cst {dimension_numbers = #tpu.dot_dimension_numbers<[1], [0], [0], [1], [0, 0, 1, 1], [], []>} : vector<256x128xbf16>, vector<128x128xbf16>, vector<256x128xf32> -> vector<256x128xf32>
    %c0_3 = arith.constant 0 : index
    %c0_4 = arith.constant 0 : index
    %3 = vector.load %arg3[%c0_3, %c0_4] : memref<1x128xf32, #tpu.memory_space<vmem>>, vector<1x128xf32>
    %4 = vector.broadcast %3 : vector<1x128xf32> to vector<256x128xf32>
    %5 = arith.addf %2, %4 : vector<256x128xf32>
    %cst_5 = arith.constant 0.000000e+00 : f32
    %6 = vector.broadcast %cst_5 : f32 to vector<256x128xf32>
    %7 = arith.maximumf %5, %6 : vector<256x128xf32>
    %8 = arith.truncf %7 : vector<256x128xf32> to vector<256x128xbf16>
    %c0_6 = arith.constant 0 : index
    %c0_7 = arith.constant 0 : index
    %9 = vector.load %arg4[%c0_6, %c0_7] : memref<128x128xbf16, #tpu.memory_space<vmem>>, vector<128x128xbf16>
    %cst_8 = arith.constant dense<0.000000e+00> : vector<256x128xf32>
    %10 = tpu.matmul %8, %9, %cst_8 {dimension_numbers = #tpu.dot_dimension_numbers<[1], [0], [0], [1], [0, 0, 1, 1], [], []>} : vector<256x128xbf16>, vector<128x128xbf16>, vector<256x128xf32> -> vector<256x128xf32>
    %c0_9 = arith.constant 0 : index
    %c0_10 = arith.constant 0 : index
    %11 = vector.load %arg5[%c0_9, %c0_10] : memref<1x128xf32, #tpu.memory_space<vmem>>, vector<1x128xf32>
    %12 = vector.broadcast %11 : vector<1x128xf32> to vector<256x128xf32>
    %13 = arith.addf %10, %12 : vector<256x128xf32>
    %cst_11 = arith.constant 0.000000e+00 : f32
    %14 = vector.broadcast %cst_11 : f32 to vector<256x128xf32>
    %15 = arith.maximumf %13, %14 : vector<256x128xf32>
    %16 = arith.truncf %15 : vector<256x128xf32> to vector<256x128xbf16>
    %c0_12 = arith.constant 0 : index
    %c0_13 = arith.constant 0 : index
    %17 = vector.load %arg6[%c0_12, %c0_13] : memref<128x128xbf16, #tpu.memory_space<vmem>>, vector<128x128xbf16>
    %cst_14 = arith.constant dense<0.000000e+00> : vector<256x128xf32>
    %18 = tpu.matmul %16, %17, %cst_14 {dimension_numbers = #tpu.dot_dimension_numbers<[1], [0], [0], [1], [0, 0, 1, 1], [], []>} : vector<256x128xbf16>, vector<128x128xbf16>, vector<256x128xf32> -> vector<256x128xf32>
    %c0_15 = arith.constant 0 : index
    %c0_16 = arith.constant 0 : index
    %19 = vector.load %arg7[%c0_15, %c0_16] : memref<1x128xf32, #tpu.memory_space<vmem>>, vector<1x128xf32>
    %20 = vector.broadcast %19 : vector<1x128xf32> to vector<256x128xf32>
    %21 = arith.addf %18, %20 : vector<256x128xf32>
    %cst_17 = arith.constant dense<0xFF800000> : vector<256xf32>
    %22 = vector.multi_reduction <maximumf>, %21, %cst_17 [1] : vector<256x128xf32> to vector<256xf32>
    %23 = vector.shape_cast %22 : vector<256xf32> to vector<256x1xf32>
    %24 = vector.broadcast %23 : vector<256x1xf32> to vector<256x128xf32>
    %25 = arith.subf %21, %24 : vector<256x128xf32>
    %26 = math.exp %25 : vector<256x128xf32>
    %cst_18 = arith.constant dense<0.000000e+00> : vector<256xf32>
    %27 = vector.multi_reduction <add>, %26, %cst_18 [1] : vector<256x128xf32> to vector<256xf32>
    %28 = vector.shape_cast %27 : vector<256xf32> to vector<256x1xf32>
    %29 = math.log %28 : vector<256x1xf32>
    %30 = vector.broadcast %29 : vector<256x1xf32> to vector<256x128xf32>
    %31 = arith.subf %25, %30 : vector<256x128xf32>
    %c0_19 = arith.constant 0 : index
    %c0_20 = arith.constant 0 : index
    %32 = vector.load %arg8[%c0_19, %c0_20] : memref<256x128xf32, #tpu.memory_space<vmem>>, vector<256x128xf32>
    tpu.vector_store %arg8[%c0_19, %c0_20], %31 {strides = array<i32>} : memref<256x128xf32, #tpu.memory_space<vmem>>, vector<256x128xf32>,
    return
  }
  func.func @transform_0(%arg0: i32) -> (i32, i32) {
    %c0_i32 = arith.constant 0 : i32
    %c0_i32_0 = arith.constant 0 : i32
    return %arg0, %c0_i32 : i32, i32
  }
  func.func @transform_1(%arg0: i32) -> (i32, i32) {
    %c0_i32 = arith.constant 0 : i32
    %c0_i32_0 = arith.constant 0 : i32
    %c0_i32_1 = arith.constant 0 : i32
    return %c0_i32, %c0_i32_0 : i32, i32
  }
  func.func @transform_2(%arg0: i32) -> (i32, i32) {
    %c0_i32 = arith.constant 0 : i32
    %c0_i32_0 = arith.constant 0 : i32
    %c0_i32_1 = arith.constant 0 : i32
    return %c0_i32, %c0_i32_0 : i32, i32
  }
  func.func @transform_3(%arg0: i32) -> (i32, i32) {
    %c0_i32 = arith.constant 0 : i32
    %c0_i32_0 = arith.constant 0 : i32
    %c0_i32_1 = arith.constant 0 : i32
    return %c0_i32, %c0_i32_0 : i32, i32
  }
  func.func @transform_4(%arg0: i32) -> (i32, i32) {
    %c0_i32 = arith.constant 0 : i32
    %c0_i32_0 = arith.constant 0 : i32
    %c0_i32_1 = arith.constant 0 : i32
    return %c0_i32, %c0_i32_0 : i32, i32
  }
  func.func @transform_5(%arg0: i32) -> (i32, i32) {
    %c0_i32 = arith.constant 0 : i32
    %c0_i32_0 = arith.constant 0 : i32
    %c0_i32_1 = arith.constant 0 : i32
    return %c0_i32, %c0_i32_0 : i32, i32
  }
  func.func @transform_6(%arg0: i32) -> (i32, i32) {
    %c0_i32 = arith.constant 0 : i32
    %c0_i32_0 = arith.constant 0 : i32
    %c0_i32_1 = arith.constant 0 : i32
    return %c0_i32, %c0_i32_0 : i32, i32
  }
  func.func @transform_7(%arg0: i32) -> (i32, i32) {
    %c0_i32 = arith.constant 0 : i32
    %c0_i32_0 = arith.constant 0 : i32
    return %arg0, %c0_i32 : i32, i32
  }
}

</mosaic_0001>

<bundles_post_ra>
// kernel: tpu_custom_call.1
= control target key start
LH: loop header
LB: loop body
LE: loop exit
PB: predicated region body
PF: predicated region fallthrough
CT: control target
= control target key end

     0   :  { %12 = vsyncpa [#allocation3], 0  ;;  %s3221_s0 = inlined_call_operand.hbm [shape: bf16[512,128], index: 0, kind: input, shape index: {}]   ;;  %s3222_s1 = inlined_call_operand.hbm [shape: bf16[128,128], index: 1, kind: input, shape index: {}]   ;;  %s3223_s2 = inlined_call_operand.vmem [shape: f32[1,128], index: 2, kind: input, shape index: {}]   ;;  %s3224_s3 = inlined_call_operand.hbm [shape: bf16[128,128], index: 3, kind: input, shape index: {}]   ;;  %s3225_s4 = inlined_call_operand.vmem [shape: f32[1,128], index: 4, kind: input, shape index: {}]   ;;  %s3226_s5 = inlined_call_operand.hbm [shape: bf16[128,128], index: 5, kind: input, shape index: {}]   ;;  %s3227_s6 = inlined_call_operand.vmem [shape: f32[1,128], index: 6, kind: input, shape index: {}]   ;;  %s3228_s7 = inlined_call_operand.hbm [shape: f32[512,128], index: 7, kind: output, shape index: {}]  }
   0x1   :  { %14 = vsyncpa [#allocation3 + $0x1], 0 }
   0x2   :  { %15 = vsyncpa [#allocation6], 0 }
   0x3   :  { %16 = vsyncpa [#allocation9], 0 }
   0x4   :  { %17 = vsyncpa [#allocation4], 0 }
   0x5   :  { %19 = vsyncpa [#allocation4 + $0x1], 0  ;;  %s2517_s24 = smov 0   ;;  %s2519_s25 = smov 0  }
   0x6   :  { %s2521_s26 = smov 0   ;;  %s2523_s27 = smov 0  }
   0x7 LB: > { %s2538_s28 = sadd.s32 4294967295, %s2466_s27   ;;  %s1732_s29 = sadd.s32 4294967294, %s2466_s27   ;;  %s2466_s27 = sphi %s2523_s27, %s3254_s27   ;;  %s2462_s26 = sphi %s2521_s26, %s3253_s26   ;;  %s2458_s25 = sphi %s2519_s25, %s3252_s25   ;;  %s2454_s24 = sphi %s2517_s24, %s3251_s24  }
   0x8   : > { %p45_p0 = scmp.ne.s32.totalorder %s2458_s25, %s2454_s24  ;;  %p3229_p1 = scmp.eq.s32.totalorder %s2538_s28, 0 }
   0x9   : > { %p201_p3 = scmp.eq.s32.totalorder %s1732_s29, 1  ;;  %p1733_p5 = scmp.ge.s32.totalorder %s2466_s27, 1 }
   0xa   : > { %p2547_p4 = por %p3229_p1, %p45_p0  ;;  %p208_p7 = scmp.lt.s32.totalorder %s2466_s27, 3 }
   0xb   : > { %p2552_p6 = por %p201_p3, %p45_p0  ;;  %s2468_s10 = smov [#allocation5]  }
   0xc   : > { %s3233_s30 = scalar_select %p2547_p4, 1, 0 }
   0xd   : > { %s3234_s8 = scalar_select %p2552_p6, 1, 0 }
   0xe   : > { %p2557_p8 = pnand %p1733_p5, %p208_p7  ;;  %s220_s11 = sshll.u32 %s2468_s10, 4  ;;  %s2561_s11 = int_to_ptr.vmem [resolvable:$true] %s220_s11 }
   0xf   : > { %3235 = sst [smem:[#allocation15_spill]] %s3234_s8  ;;  %s2469_s13 = smov [#allocation7]  }
  0x10   : > { %s3236_s9 = scalar_select %p2557_p8, 1, 0 }
  0x11   : > { %p2045_p9 = pneg %p2557_p8  ;;  %s236_s14 = sshll.u32 %s2469_s13, 4  ;;  %s2572_s14 = int_to_ptr.vmem [resolvable:$true] %s236_s14 }
  0x12   : > { %s2470_s15 = smov [#allocation8]   ;;  %s2278_s19 = scalar_lea.hbm %s3222_s1, 1024 }
  0x13   : > { %p2568_p11 = pnand %p2045_p9, %p3229_p1  ;;  %s2574_s16 = sshll.u32 %s2470_s15, 4  ;;  %s253_s16 = int_to_ptr.vmem [resolvable:$true] %s2574_s16 }
  0x14   : > { %p2279_p12 = scmp.ne.s32.totalorder %s3222_s1, %s2278_s19  ;;  %p2285_p5 = scmp.lt.u32.totalorder %s2278_s19, %s3222_s1 }
  0x15   : > { %p2584_p13 = pneg %p2568_p11 }
  0x17   : > { %p2281_p0 = pnand %p2584_p13, %p2279_p12 }
  0x19   : > { %p2282_p3 = pneg %p2281_p0 }
  0x1b   : > { %p2287_p7 = pnand %p2285_p5, %p2282_p3 }
  0x1d   : > { %2290 = shalt.err (!%p2287_p7)
}
  0x1e   : > { %s2291_s10 = scalar_lea.vmem %s2561_s11, 1024  ;;  %p2299_p2 = scmp.lt.s32.totalorder %s2561_s11, %s2561_s11 }
  0x1f   : > { %p2292_p9 = scmp.ne.s32.totalorder %s2561_s11, %s2291_s10  ;;  %p2300_p6 = scmp.lt.s32.totalorder %s2291_s10, %s2291_s10 }
  0x21   : > { %p2294_p10 = pnand %p2292_p9, %p2584_p13  ;;  %p2301_p12 = por %p2300_p6, %p2299_p2 }
  0x23   : > { %p2295_p1 = pneg %p2294_p10 }
  0x25   : > { %p2302_p0 = pnand %p2301_p12, %p2295_p1 }
  0x27   : > { %2305 = shalt.err (!%p2302_p0)
}
  0x28   : > { %s2471_s13 = smov 64   ;;  %s2472_s15 = smov 4  }
  0x29   : > { %2048 = dma.hbm_to_vmem [thread:$0]  (!%p2568_p11), %s3222_s1, 1024, %s2561_s11, [#allocation6], %s2471_s13, %s2471_s13, %s2472_s15  }
  0x2a   : > { %s2306_s21 = scalar_lea.hbm %s3224_s3, 1024 }
  0x2b   : > { %p2307_p1 = scmp.ne.s32.totalorder %s3224_s3, %s2306_s21  ;;  %p2313_p10 = scmp.lt.u32.totalorder %s2306_s21, %s3224_s3 }
  0x2d   : > { %p2309_p2 = pnand %p2307_p1, %p2584_p13 }
  0x2f   : > { %p2310_p6 = pneg %p2309_p2 }
  0x31   : > { %p2315_p3 = pnand %p2313_p10, %p2310_p6 }
  0x33   : > { %2318 = shalt.err (!%p2315_p3)
}
  0x34   : > { %s2319_s11 = scalar_lea.vmem %s2572_s14, 1024  ;;  %p2327_p12 = scmp.lt.s32.totalorder %s2572_s14, %s2572_s14 }
  0x35   : > { %p2320_p5 = scmp.ne.s32.totalorder %s2572_s14, %s2319_s11  ;;  %p2328_p0 = scmp.lt.s32.totalorder %s2319_s11, %s2319_s11 }
  0x37   : > { %p2322_p7 = pnand %p2320_p5, %p2584_p13  ;;  %p2329_p1 = por %p2328_p0, %p2327_p12 }
  0x39   : > { %p2323_p9 = pneg %p2322_p7 }
  0x3b   : > { %p2330_p2 = pnand %p2329_p1, %p2323_p9 }
  0x3d   : > { %2333 = shalt.err (!%p2330_p2)
}
  0x3e   : > { %2051 = dma.hbm_to_vmem [thread:$0]  (!%p2568_p11), %s3224_s3, 1024, %s2572_s14, [#allocation6], %s2471_s13, %s2471_s13, %s2472_s15  }
  0x3f   : > { %s2334_s20 = scalar_lea.hbm %s3226_s5, 1024 }
  0x40   : > { %p2335_p6 = scmp.ne.s32.totalorder %s3226_s5, %s2334_s20  ;;  %p2341_p5 = scmp.lt.u32.totalorder %s2334_s20, %s3226_s5 }
  0x42   : > { %p2337_p10 = pnand %p2335_p6, %p2584_p13 }
  0x44   : > { %p2338_p3 = pneg %p2337_p10 }
  0x46   : > { %p2343_p7 = pnand %p2341_p5, %p2338_p3 }
  0x48   : > { %2346 = shalt.err (!%p2343_p7)
}
  0x49   : > { %s2347_s11 = scalar_lea.vmem %s253_s16, 1024  ;;  %p2355_p1 = scmp.lt.s32.totalorder %s253_s16, %s253_s16 }
  0x4a   : > { %p2348_p9 = scmp.ne.s32.totalorder %s253_s16, %s2347_s11  ;;  %p2356_p2 = scmp.lt.s32.totalorder %s2347_s11, %s2347_s11 }
  0x4c   : > { %p2350_p12 = pnand %p2348_p9, %p2584_p13  ;;  %p2357_p4 = por %p2356_p2, %p2355_p1 }
  0x4e   : > { %p2351_p0 = pneg %p2350_p12 }
  0x50   : > { %p2358_p8 = pnand %p2357_p4, %p2351_p0 }
  0x52   : > { %2361 = shalt.err (!%p2358_p8)
}
  0x53   : > { %2054 = dma.hbm_to_vmem [thread:$0]  (!%p2568_p11), %s3226_s5, 1024, %s253_s16, [#allocation9], %s2471_s13, %s2471_s13, %s2472_s15  }
  0x54   : > { %s2657_s22 = sadd.s32 1, %s2466_s27   ;;  %s32_s17 = sadd.s32 1, %s2462_s26 }
  0x55   : > { %s29_s12 = ssub.s32 %s2466_s27, %s2657_s22  ;;  %p39_p8 = scmp.ne.s32.totalorder %s2462_s26, %s2458_s25 }
  0x56   : > { %p30_p4 = scmp.eq.s32.totalorder %s29_s12, 0  ;;  %p40_p13 = scmp.eq.s32.totalorder %s2466_s27, 0 }
  0x57   : > { %p2066_p6 = scmp.lt.s32.totalorder %s2466_s27, 2  ;;  %p3239_p3 = scmp.eq.s32.totalorder %s2538_s28, 1 }
  0x58   : > { %s2667_s18 = scalar_select %p30_p4, %s2462_s26, %s32_s17  }
  0x59   : > { %p41_p10 = por %p40_p13, %p39_p8  ;;  %p2671_p5 = por %p3239_p3, %p39_p8 }
  0x5a   : > { %s269_s20 = sand.u32 1, %s2462_s26   ;;  %s1795_s21 = sshll.u32 %s2466_s27, 11 }
  0x5b   : > { %s1738_s16 = sshll.u32 %s269_s20, 7  ;;  %s2680_s10 = scalar_lea.hbm %s3221_s0, %s1795_s21 }
  0x5c   : > { %s273_s11 = scalar_lea.vmem [#allocation2], %s1738_s16  ;;  %p2682_p11 = pnand %p2066_p6, %p41_p10 }
  0x5d   : > { %s280_s14 = sshll.u32 %s273_s11, 4  ;;  %s2688_s12 = scalar_lea.sflag [#allocation3], %s269_s20  ;;  %s2686_s14 = int_to_ptr.vmem [resolvable:$true] %s280_s14 }
  0x5e   : > { %s2362_s17 = scalar_lea.hbm %s2680_s10, 2048  ;;  %p2364_p9 = pneg %p2682_p11 }
  0x5f   : > { %p2363_p7 = scmp.ne.s32.totalorder %s2680_s10, %s2362_s17  ;;  %s2367_s23 = scalar_lea.hbm %s3221_s0, 4096 }
  0x60   : > { %p2368_p1 = scmp.lt.u32.totalorder %s2680_s10, %s3221_s0  ;;  %p2369_p2 = scmp.lt.u32.totalorder %s2367_s23, %s2362_s17 }
  0x61   : > { %p2365_p12 = pnand %p2364_p9, %p2363_p7  ;;  %p2371_p8 = scmp.lt.u32.totalorder %s2362_s17, %s2680_s10 }
  0x62   : > { %p2370_p4 = por %p2369_p2, %p2368_p1 }
  0x63   : > { %p2366_p0 = pneg %p2365_p12 }
  0x64   : > { %p2372_p13 = por %p2371_p8, %p2370_p4 }
  0x66   : > { %p2373_p6 = pnand %p2372_p13, %p2366_p0 }
  0x68   : > { %2376 = shalt.err (!%p2373_p6)
}
  0x69   : > { %s2377_s20 = scalar_lea.vmem %s2686_s14, 2048  ;;  %s2473_s21 = smov [#allocation2]  }
  0x6a   : > { %p2378_p10 = scmp.ne.s32.totalorder %s2686_s14, %s2377_s20  ;;  %s2382_s16 = sshll.u32 %s2473_s21, 4  ;;  %s2383_s16 = int_to_ptr.vmem [resolvable:$false] %s2382_s16 }
  0x6b   : > { %s2384_s29 = scalar_lea.vmem %s2383_s16, 4096  ;;  %p2385_p12 = scmp.lt.s32.totalorder %s2686_s14, %s2383_s16 }
  0x6c   : > { %p2380_p3 = pnand %p2378_p10, %p2364_p9  ;;  %p2386_p1 = scmp.lt.s32.totalorder %s2384_s29, %s2377_s20 }
  0x6e   : > { %p2381_p7 = pneg %p2380_p3  ;;  %p2387_p2 = por %p2386_p1, %p2385_p12 }
  0x70   : > { %p2388_p4 = pnand %p2387_p2, %p2381_p7 }
  0x72   : > { %2391 = shalt.err (!%p2388_p4)
}
  0x73   : > { %2058 = dma.hbm_to_vmem [thread:$0]  (!%p2682_p11), %s2680_s10, 2048, %s2686_s14, %s2688_s12, %s2471_s13, %s2471_s13, %s2472_s15  }
  0x74   : > { %p3242_p9 = scmp.ne.s32.totalorder %s3236_s9, 0 }
  0x75   : > { %s2722_s17 = sand.u32 (!%p3242_p9), 1, %s2458_s25   ;;  %p3243_p0 = scmp.ne.s32.totalorder (!%p3242_p9), %s3233_s30, 0 }
  0x76   : > { %292 = sbr.rel (%p3242_p9) target bundleno = 1217 (0x4c1), region = 48  ;;  %s1742_s23 = sshll.u32 (!%p3242_p9), %s2722_s17, 7 }
  0x77   : > { %s295_s11 = scalar_lea.sflag (!%p3242_p9), [#allocation3], %s2722_s17  ;;  %s2726_s20 = scalar_lea.vmem (!%p3242_p9), [#allocation2], %s1742_s23 }
  0x7d   : > { %2437 = dma.done.wait (%p3243_p0), %s295_s11, 2048  }
  0x7e   : > { %2439 = vsyncadd (%p3243_p0), %s295_s11, 4294965248  ;;  %p3244_p11 = scmp.eq.s32.totalorder %s2538_s28, 0 }
  0x80   : > { %2441 = dma.done.wait (%p3244_p11), [#allocation6], 2048   ;;  %p3245_p8 = pmov %p3244_p11 }
  0x82   : > { %2443 = vsyncadd (%p3245_p8), [#allocation6], 4294965248  ;;  %p3246_p13 = pmov %p3245_p8 }
  0x83   : > { %p3247_p6 = pmov %p3245_p8 }
  0x84   : > { %2445 = dma.done.wait (%p3246_p13), [#allocation9], 1024  }
  0x85   : > { %2447 = vsyncadd (%p3247_p6), [#allocation9], 4294966272  ;;  %v2110_v0 = vld [vmem:[#allocation5] sm:$0xff]   ;;  %v2111_v1 = vld [vmem:[#allocation5 + $0x8] sm:$0xff]   ;;  %s1746_s8 = sshll.u32 %s2722_s17, 8  ;;  %s1796_s21 = sshll.u32 %s2538_s28, 12 }
  0x86   : > { %1869 = vmatprep.subr.bf16.mxu0 %v2110_v0  ;;  %2013 = vmatprep.subr.bf16.mxu1 %v2110_v0  ;;  %v2112_v2 = vld [vmem:[#allocation5 + $0x10] sm:$0xff]   ;;  %v2113_v3 = vld [vmem:[#allocation5 + $0x18] sm:$0xff]   ;;  %v2118_v4 = vld [vmem:[%s2726_s20] sm:$0xff]   ;;  %s3105_s12 = scalar_lea.vmem [#allocation10], %s1746_s8  ;;  %s3173_s11 = scalar_lea.hbm %s3228_s7, %s1796_s21 }
  0x87   : > { %1870 = vmatpush3.bf16.msra.mxu0 %v2110_v0  ;;  %2021 = vmatpush3.bf16.msra.mxu1 %v2110_v0  ;;  %v2114_v5 = vld [vmem:[#allocation5 + $0x20] sm:$0xff]   ;;  %v2115_v6 = vld [vmem:[#allocation5 + $0x28] sm:$0xff]   ;;  %v2116_v8 = vld [vmem:[#allocation5 + $0x30] sm:$0xff]   ;;  %s1630_s16 = sshll.u32 %s3105_s12, 4  ;;  %s1617_s28 = scalar_lea.sflag [#allocation4], %s2722_s17  ;;  %s3175_s16 = int_to_ptr.vmem [resolvable:$true] %s1630_s16 }
  0x88   : > { %1871 = vmatprep.subr.bf16.mxu0 %v2111_v1  ;;  %2014 = vmatprep.subr.bf16.mxu1 %v2111_v1  ;;  %v2126_v7 = vld [vmem:[%s2726_s20 + $0x40] sm:$0xff]   ;;  %v2117_v9 = vld [vmem:[#allocation5 + $0x38] sm:$0xff]   ;;  %v2119_v10 = vld [vmem:[%s2726_s20 + $0x8] sm:$0xff]   ;;  %s2474_s30 = smov [#allocation10]  }
  0x89   : > { %1885 = vmatprep.mubr.bf16.mxu0 %v2118_v4  ;;  %1901 = vmatprep.mubr.bf16.mxu1 %v2126_v7  ;;  %v2127_v11 = vld [vmem:[%s2726_s20 + $0x48] sm:$0xff]   ;;  %v2134_v12 = vld [vmem:[#allocation7] sm:$0xff]   ;;  %v2120_v13 = vld [vmem:[%s2726_s20 + $0x10] sm:$0xff]   ;;  %s2396_s9 = sshll.u32 %s2474_s30, 4  ;;  %s2397_s9 = int_to_ptr.vmem [resolvable:$false] %s2396_s9 }
  0x8a   : > { %v2128_v14 = vld [vmem:[%s2726_s20 + $0x50] sm:$0xff]   ;;  %v2135_v15 = vld [vmem:[#allocation7 + $0x8] sm:$0xff]   ;;  %v2121_v17 = vld [vmem:[%s2726_s20 + $0x18] sm:$0xff]   ;;  %s2398_s13 = scalar_lea.vmem %s2397_s9, 8192  ;;  %p2399_p12 = scmp.lt.s32.totalorder %s3175_s16, %s2397_s9 }
  0x8b   : > { %1872 = vmatpush3.bf16.msra.mxu0 %v2111_v1  ;;  %2022 = vmatpush3.bf16.msra.mxu1 %v2111_v1  ;;  %v2136_v16 = vld [vmem:[#allocation7 + $0x10] sm:$0xff]   ;;  %v2129_v18 = vld [vmem:[%s2726_s20 + $0x58] sm:$0xff]   ;;  %v2122_v19 = vld [vmem:[%s2726_s20 + $0x20] sm:$0xff]  }
  0x8c   : > { %1873 = vmatprep.subr.bf16.mxu0 %v2112_v2  ;;  %2015 = vmatprep.subr.bf16.mxu1 %v2112_v2  ;;  %v2130_v20 = vld [vmem:[%s2726_s20 + $0x60] sm:$0xff]   ;;  %v2137_v21 = vld [vmem:[#allocation7 + $0x18] sm:$0xff]   ;;  %v2123_v23 = vld [vmem:[%s2726_s20 + $0x28] sm:$0xff]  }
  0x8d   : > { %v2138_v22 = vld [vmem:[#allocation7 + $0x20] sm:$0xff]   ;;  %v2131_v24 = vld [vmem:[%s2726_s20 + $0x68] sm:$0xff]   ;;  %v2124_v25 = vld [vmem:[%s2726_s20 + $0x30] sm:$0xff]  }
  0x8e   : > { %v2132_v26 = vld [vmem:[%s2726_s20 + $0x70] sm:$0xff]   ;;  %v2139_v27 = vld [vmem:[#allocation7 + $0x28] sm:$0xff]   ;;  %v2125_v28 = vld [vmem:[%s2726_s20 + $0x38] sm:$0xff]  }
  0x8f   : > { %1874 = vmatpush3.bf16.msra.mxu0 %v2112_v2  ;;  %2023 = vmatpush3.bf16.msra.mxu1 %v2112_v2  ;;  %v2133_v29 = vld [vmem:[%s2726_s20 + $0x78] sm:$0xff]   ;;  %v2140_v30 = vld [vmem:[#allocation7 + $0x30] sm:$0xff]   ;;  %v2142_v32 = vld [vmem:[#allocation8] sm:$0xff]   ;;  %s2392_s20 = scalar_lea.vmem %s3175_s16, 4096 }
  0x90   : > { %1875 = vmatprep.subr.bf16.mxu0 %v2113_v3  ;;  %2016 = vmatprep.subr.bf16.mxu1 %v2113_v3  ;;  %v2141_v31 = vld [vmem:[#allocation7 + $0x38] sm:$0xff]   ;;  %v2143_v33 = vld [vmem:[#allocation8 + $0x8] sm:$0xff]   ;;  %v2144_v34 = vld [vmem:[#allocation8 + $0x10] sm:$0xff]   ;;  %p2393_p10 = scmp.ne.s32.totalorder %s3175_s16, %s2392_s20  ;;  %p2400_p1 = scmp.lt.s32.totalorder %s2398_s13, %s2392_s20 }
  0x91   : > { %v2145_v35 = vld [vmem:[#allocation8 + $0x18] sm:$0xff]   ;;  %v2146_v36 = vld [vmem:[#allocation8 + $0x20] sm:$0xff]   ;;  %v2147_v37 = vld [vmem:[#allocation8 + $0x28] sm:$0xff]  }
  0x92   : > { %v2759_v38 = vld [vmem:[%s3223_s2] ss:$0 sm:$0xff]  ;;  %p2394_p3 = pnand %p2393_p10, %p2671_p5  ;;  %p2401_p2 = por %p2400_p1, %p2399_p12 }
  0x93   : > { %1876 = vmatpush3.bf16.msra.mxu0 %v2113_v3  ;;  %2024 = vmatpush3.bf16.msra.mxu1 %v2113_v3 }
  0x94   : > { %1877 = vmatprep.subr.bf16.mxu0 %v2114_v5  ;;  %2017 = vmatprep.subr.bf16.mxu1 %v2114_v5  ;;  %p2395_p7 = pneg %p2394_p3 }
  0x96   : > { %p2402_p4 = pnand %p2401_p2, %p2395_p7 }
  0x97   : > { %1878 = vmatpush3.bf16.msra.mxu0 %v2114_v5  ;;  %2025 = vmatpush3.bf16.msra.mxu1 %v2114_v5 }
  0x98   : > { %1879 = vmatprep.subr.bf16.mxu0 %v2115_v6  ;;  %2018 = vmatprep.subr.bf16.mxu1 %v2115_v6 }
  0x9b   : > { %1880 = vmatpush3.bf16.msra.mxu0 %v2115_v6  ;;  %2026 = vmatpush3.bf16.msra.mxu1 %v2115_v6 }
  0x9c   : > { %1881 = vmatprep.subr.bf16.mxu0 %v2116_v8  ;;  %2019 = vmatprep.subr.bf16.mxu1 %v2116_v8 }
  0x9f   : > { %1882 = vmatpush3.bf16.msra.mxu0 %v2116_v8  ;;  %2027 = vmatpush3.bf16.msra.mxu1 %v2116_v8 }
  0xa0   : > { %1883 = vmatprep.subr.bf16.mxu0 %v2117_v9  ;;  %2020 = vmatprep.subr.bf16.mxu1 %v2117_v9 }
  0xa3   : > { %1884 = vmatpush3.bf16.msra.mxu0 %v2117_v9  ;;  %2028 = vmatpush3.bf16.msra.mxu1 %v2117_v9 }
  0xa4   : > { %1917 = vmatprep.subr.bf16.mxu1 %v2134_v12  ;;  %1965 = vmatprep.subr.bf16.mxu0 %v2142_v32 }
  0xa6   : > { %1886 = vmatmul.mubr.bf16.vlgmr.msra.gmra.mrb[0].mxu0 %v2119_v10  ;;  %1902 = vmatmul.mubr.bf16.vlgmr.msra.gmra.mrb[0].mxu1 %v2127_v11 }
  0xa7   : > { %1889 = vmatprep.mubr.bf16.mxu0 %v2120_v13  ;;  %1905 = vmatprep.mubr.bf16.mxu1 %v2128_v14 }
  0xa8   : > { %1918 = vmatpush3.bf16.msra.mxu1 %v2134_v12  ;;  %1966 = vmatpush3.bf16.msra.mxu0 %v2142_v32 }
  0xa9   : > { %1919 = vmatprep.subr.bf16.mxu1 %v2135_v15  ;;  %1967 = vmatprep.subr.bf16.mxu0 %v2143_v33 }
  0xac   : > { %1920 = vmatpush3.bf16.msra.mxu1 %v2135_v15  ;;  %1968 = vmatpush3.bf16.msra.mxu0 %v2143_v33 }
  0xad   : > { %1921 = vmatprep.subr.bf16.mxu1 %v2136_v16  ;;  %1969 = vmatprep.subr.bf16.mxu0 %v2144_v34 }
  0xae   : > { %1890 = vmatmul.mubr.bf16.gmra.mrb[4].mxu0 %v2121_v17  ;;  %1906 = vmatmul.mubr.bf16.gmra.mrb[4].mxu1 %v2129_v18 }
  0xaf   : > { %1893 = vmatprep.mubr.bf16.mxu0 %v2122_v19  ;;  %1909 = vmatprep.mubr.bf16.mxu1 %v2130_v20 }
  0xb0   : > { %1922 = vmatpush3.bf16.msra.mxu1 %v2136_v16  ;;  %1970 = vmatpush3.bf16.msra.mxu0 %v2144_v34 }
  0xb1   : > { %1923 = vmatprep.subr.bf16.mxu1 %v2137_v21  ;;  %1971 = vmatprep.subr.bf16.mxu0 %v2145_v35 }
  0xb4   : > { %1924 = vmatpush3.bf16.msra.mxu1 %v2137_v21  ;;  %1972 = vmatpush3.bf16.msra.mxu0 %v2145_v35 }
  0xb5   : > { %1925 = vmatprep.subr.bf16.mxu1 %v2138_v22  ;;  %1973 = vmatprep.subr.bf16.mxu0 %v2146_v36 }
  0xb6   : > { %1894 = vmatmul.mubr.bf16.gmra.mrb[8].mxu0 %v2123_v23  ;;  %1910 = vmatmul.mubr.bf16.gmra.mrb[8].mxu1 %v2131_v24 }
  0xb7   : > { %1897 = vmatprep.mubr.bf16.mxu0 %v2124_v25  ;;  %1913 = vmatprep.mubr.bf16.mxu1 %v2132_v26 }
  0xb8   : > { %1926 = vmatpush3.bf16.msra.mxu1 %v2138_v22  ;;  %1974 = vmatpush3.bf16.msra.mxu0 %v2146_v36 }
  0xb9   : > { %1927 = vmatprep.subr.bf16.mxu1 %v2139_v27  ;;  %1975 = vmatprep.subr.bf16.mxu0 %v2147_v37 }
  0xbc   : > { %1928 = vmatpush3.bf16.msra.mxu1 %v2139_v27  ;;  %1976 = vmatpush3.bf16.msra.mxu0 %v2147_v37 }
  0xbd   : > { %1929 = vmatprep.subr.bf16.mxu1 %v2140_v30 }
  0xbe   : > { %1898 = vmatmul.mubr.bf16.gmra.mrb[12].mxu0 %v2125_v28  ;;  %1914 = vmatmul.mubr.bf16.gmra.mrb[12].mxu1 %v2133_v29 }
  0xc0   : > { %1930 = vmatpush3.bf16.msra.mxu1 %v2140_v30 }
  0xc1   : > { %1931 = vmatprep.subr.bf16.mxu1 %v2141_v31 }
  0xc4   : > { %1932 = vmatpush3.bf16.msra.mxu1 %v2141_v31 }
 0x179   : > { %v1887_v39 = vpop.f32.mrb[0].mxu0  ;;  %v1903_v40 = vpop.f32.mrb[0].mxu1 }
 0x17a   : > { %v586_v41 = vadd.f32 %v1887_v39, %v2759_v38  ;;  %v577_v42 = vpop.f32.mrb[1].mxu0  ;;  %v650_v43 = vadd.f32 %v1903_v40, %v2759_v38  ;;  %v641_v44 = vpop.f32.mrb[1].mxu1 }
 0x17b   : > { %v578_v45 = vadd.f32 %v2759_v38, %v577_v42  ;;  %v1888_v46 = vpop.f32.mrb[2].mxu0  ;;  %v642_v47 = vadd.f32 %v2759_v38, %v641_v44  ;;  %v1904_v48 = vpop.f32.mrb[2].mxu1 }
 0x17c   : > { %v589_v49 = vadd.f32 %v1888_v46, %v2759_v38  ;;  %v580_v50 = vpop.f32.mrb[3].mxu0  ;;  %v722_v51 = vmax.f32 %v650_v43, 0.0  ;;  %v653_v52 = vadd.f32 %v1904_v48, %v2759_v38  ;;  %v644_v53 = vpop.f32.mrb[3].mxu1  ;;  %v706_v57 = vmax.f32 %v586_v41, 0.0 }
 0x17d   : > { %v581_v54 = vadd.f32 %v2759_v38, %v580_v50  ;;  %v720_v55 = vmax.f32 %v642_v47, 0.0  ;;  %v645_v56 = vadd.f32 %v2759_v38, %v644_v53  ;;  %v704_v60 = vmax.f32 %v578_v45, 0.0 }
 0x17e   : > { %v707_v58 = vmax.f32 %v589_v49, 0.0  ;;  %v723_v59 = vmax.f32 %v653_v52, 0.0 }
 0x17f   : > { %v705_v61 = vmax.f32 %v581_v54, 0.0  ;;  %v721_v62 = vmax.f32 %v645_v56, 0.0 }
 0x180   : > { %v737_v63 = vpack.c.bf16 %v707_v58, %v706_v57  ;;  %v2769_v0 = vpack.c.bf16 %v723_v59, %v722_v51 }
 0x181   : > { %v736_v1 = vpack.c.bf16 %v705_v61, %v704_v60  ;;  %v1891_v2 = vpop.f32.mrb[4].mxu0  ;;  %v2771_v3 = vpack.c.bf16 %v721_v62, %v720_v55  ;;  %v1907_v4 = vpop.f32.mrb[4].mxu1 }
 0x182   : > { %v602_v5 = vadd.f32 %v1891_v2, %v2759_v38  ;;  %v593_v6 = vpop.f32.mrb[5].mxu0  ;;  %v666_v7 = vadd.f32 %v1907_v4, %v2759_v38  ;;  %v657_v8 = vpop.f32.mrb[5].mxu1 }
 0x183   : > { %v594_v9 = vadd.f32 %v2759_v38, %v593_v6  ;;  %v1892_v10 = vpop.f32.mrb[6].mxu0  ;;  %1933 = vmatprep.mubr.bf16.mxu1 %v736_v1  ;;  %v658_v11 = vadd.f32 %v2759_v38, %v657_v8  ;;  %v1908_v12 = vpop.f32.mrb[6].mxu1 }
 0x184   : > { %v710_v13 = vmax.f32 %v602_v5, 0.0  ;;  %v605_v14 = vadd.f32 %v1892_v10, %v2759_v38  ;;  %v596_v15 = vpop.f32.mrb[7].mxu0  ;;  %1934 = vmatmul.mubr.bf16.vlgmr.msra.gmra.mrb[16].mxu1 %v737_v63  ;;  %v726_v16 = vmax.f32 %v666_v7, 0.0  ;;  %v669_v17 = vadd.f32 %v1908_v12, %v2759_v38  ;;  %v660_v18 = vpop.f32.mrb[7].mxu1 }
 0x185   : > { %v597_v19 = vadd.f32 %v2759_v38, %v596_v15  ;;  %v724_v20 = vmax.f32 %v658_v11, 0.0  ;;  %v661_v21 = vadd.f32 %v2759_v38, %v660_v18  ;;  %v708_v24 = vmax.f32 %v594_v9, 0.0 }
 0x186   : > { %v711_v22 = vmax.f32 %v605_v14, 0.0  ;;  %v727_v23 = vmax.f32 %v669_v17, 0.0 }
 0x187   : > { %v709_v25 = vmax.f32 %v597_v19, 0.0  ;;  %v725_v26 = vmax.f32 %v661_v21, 0.0 }
 0x188   : > { %v739_v27 = vpack.c.bf16 %v711_v22, %v710_v13  ;;  %v2781_v28 = vpack.c.bf16 %v727_v23, %v726_v16 }
 0x189   : > { %v738_v29 = vpack.c.bf16 %v709_v25, %v708_v24  ;;  %v1895_v30 = vpop.f32.mrb[8].mxu0  ;;  %v2783_v31 = vpack.c.bf16 %v725_v26, %v724_v20  ;;  %v1911_v32 = vpop.f32.mrb[8].mxu1  ;;  %v2149_v26 = vld [vmem:[#allocation8 + $0x38] sm:$0xff]  }
 0x18a   : > { %v618_v33 = vadd.f32 %v1895_v30, %v2759_v38  ;;  %v609_v34 = vpop.f32.mrb[9].mxu0  ;;  %v682_v35 = vadd.f32 %v1911_v32, %v2759_v38  ;;  %v673_v36 = vpop.f32.mrb[9].mxu1 }
 0x18b   : > { %v610_v37 = vadd.f32 %v2759_v38, %v609_v34  ;;  %v1896_v39 = vpop.f32.mrb[10].mxu0  ;;  %1937 = vmatprep.mubr.bf16.mxu1 %v738_v29  ;;  %v674_v40 = vadd.f32 %v2759_v38, %v673_v36  ;;  %v1912_v41 = vpop.f32.mrb[10].mxu1 }
 0x18c   : > { %v714_v42 = vmax.f32 %v618_v33, 0.0  ;;  %v621_v43 = vadd.f32 %v1896_v39, %v2759_v38  ;;  %v612_v44 = vpop.f32.mrb[11].mxu0  ;;  %1938 = vmatmul.mubr.bf16.gmra.mrb[20].mxu1 %v739_v27  ;;  %v730_v45 = vmax.f32 %v682_v35, 0.0  ;;  %v685_v46 = vadd.f32 %v1912_v41, %v2759_v38  ;;  %v676_v47 = vpop.f32.mrb[11].mxu1 }
 0x18d   : > { %v613_v48 = vadd.f32 %v2759_v38, %v612_v44  ;;  %v728_v49 = vmax.f32 %v674_v40, 0.0  ;;  %v677_v50 = vadd.f32 %v2759_v38, %v676_v47  ;;  %v712_v53 = vmax.f32 %v610_v37, 0.0 }
 0x18e   : > { %v715_v51 = vmax.f32 %v621_v43, 0.0  ;;  %v731_v52 = vmax.f32 %v685_v46, 0.0 }
 0x18f   : > { %v713_v54 = vmax.f32 %v613_v48, 0.0  ;;  %v729_v55 = vmax.f32 %v677_v50, 0.0 }
 0x190   : > { %v741_v56 = vpack.c.bf16 %v715_v51, %v714_v42  ;;  %v749_v57 = vpack.c.bf16 %v731_v52, %v730_v45 }
 0x191   : > { %v740_v58 = vpack.c.bf16 %v713_v54, %v712_v53  ;;  %v1899_v59 = vpop.f32.mrb[12].mxu0  ;;  %v748_v60 = vpack.c.bf16 %v729_v55, %v728_v49  ;;  %v1915_v61 = vpop.f32.mrb[12].mxu1 }
 0x192   : > { %v634_v62 = vadd.f32 %v1899_v59, %v2759_v38  ;;  %v625_v63 = vpop.f32.mrb[13].mxu0  ;;  %v698_v1 = vadd.f32 %v1915_v61, %v2759_v38  ;;  %v689_v2 = vpop.f32.mrb[13].mxu1 }
 0x193   : > { %v626_v4 = vadd.f32 %v2759_v38, %v625_v63  ;;  %v1900_v5 = vpop.f32.mrb[14].mxu0  ;;  %1941 = vmatprep.mubr.bf16.mxu1 %v740_v58  ;;  %v690_v6 = vadd.f32 %v2759_v38, %v689_v2  ;;  %v1916_v7 = vpop.f32.mrb[14].mxu1 }
 0x194   : > { %v718_v8 = vmax.f32 %v634_v62, 0.0  ;;  %v637_v9 = vadd.f32 %v1900_v5, %v2759_v38  ;;  %v628_v10 = vpop.f32.mrb[15].mxu0  ;;  %1942 = vmatmul.mubr.bf16.gmra.mrb[24].mxu1 %v741_v56  ;;  %v734_v11 = vmax.f32 %v698_v1, 0.0  ;;  %v701_v12 = vadd.f32 %v1916_v7, %v2759_v38  ;;  %v692_v13 = vpop.f32.mrb[15].mxu1 }
 0x195   : > { %v629_v14 = vadd.f32 %v2759_v38, %v628_v10  ;;  %v732_v15 = vmax.f32 %v690_v6, 0.0  ;;  %v693_v16 = vadd.f32 %v2759_v38, %v692_v13  ;;  %v716_v19 = vmax.f32 %v626_v4, 0.0  ;;  %v2148_v38 = vld [vmem:[#allocation8 + $0x30] sm:$0xff]  }
 0x196   : > { %v719_v17 = vmax.f32 %v637_v9, 0.0  ;;  %v735_v18 = vmax.f32 %v701_v12, 0.0  ;;  %1977 = vmatprep.subr.bf16.mxu0 %v2148_v38 }
 0x197   : > { %v717_v20 = vmax.f32 %v629_v14, 0.0  ;;  %v733_v21 = vmax.f32 %v693_v16, 0.0  ;;  %1978 = vmatpush3.bf16.msra.mxu0 %v2148_v38 }
 0x198   : > { %v743_v22 = vpack.c.bf16 %v719_v17, %v718_v8  ;;  %v751_v23 = vpack.c.bf16 %v735_v18, %v734_v11  ;;  %1979 = vmatprep.subr.bf16.mxu0 %v2149_v26 }
 0x199   : > { %v742_v24 = vpack.c.bf16 %v717_v20, %v716_v19  ;;  %v750_v25 = vpack.c.bf16 %v733_v21, %v732_v15 }
 0x19b   : > { %1945 = vmatprep.mubr.bf16.mxu1 %v742_v24  ;;  %1980 = vmatpush3.bf16.msra.mxu0 %v2149_v26 }
 0x19c   : > { %1946 = vmatmul.mubr.bf16.gmra.mrb[28].mxu1 %v743_v22 }
 0x19d   : > { %1949 = vmatprep.mubr.bf16.mxu1 %v2771_v3  ;;  %v2808_v3 = vld [vmem:[%s3225_s4] ss:$0 sm:$0xff] }
 0x1a4   : > { %1950 = vmatmul.mubr.bf16.gmra.mrb[32].mxu1 %v2769_v0 }
 0x1a5   : > { %1953 = vmatprep.mubr.bf16.mxu1 %v2783_v31 }
 0x1ac   : > { %1954 = vmatmul.mubr.bf16.gmra.mrb[36].mxu1 %v2781_v28 }
 0x1ad   : > { %1957 = vmatprep.mubr.bf16.mxu1 %v748_v60 }
 0x1b4   : > { %1958 = vmatmul.mubr.bf16.gmra.mrb[40].mxu1 %v749_v57 }
 0x1b5   : > { %1961 = vmatprep.mubr.bf16.mxu1 %v750_v25 }
 0x1bc   : > { %1962 = vmatmul.mubr.bf16.gmra.mrb[44].mxu1 %v751_v23 }
 0x257   : > { %v1935_v0 = vpop.f32.mrb[16].mxu1 }
 0x258   : > { %v866_v27 = vadd.f32 %v1935_v0, %v2808_v3  ;;  %v857_v29 = vpop.f32.mrb[17].mxu1 }
 0x259   : > { %v858_v28 = vadd.f32 %v2808_v3, %v857_v29  ;;  %v1936_v30 = vpop.f32.mrb[18].mxu1 }
 0x25a   : > { %v869_v31 = vadd.f32 %v1936_v30, %v2808_v3  ;;  %v860_v32 = vpop.f32.mrb[19].mxu1  ;;  %v986_v34 = vmax.f32 %v866_v27, 0.0 }
 0x25b   : > { %v861_v33 = vadd.f32 %v2808_v3, %v860_v32  ;;  %v984_v36 = vmax.f32 %v858_v28, 0.0 }
 0x25c   : > { %v987_v35 = vmax.f32 %v869_v31, 0.0 }
 0x25d   : > { %v985_v37 = vmax.f32 %v861_v33, 0.0 }
 0x25e   : > { %v1017_v39 = vpack.c.bf16 %v987_v35, %v986_v34 }
 0x25f   : > { %v1016_v40 = vpack.c.bf16 %v985_v37, %v984_v36  ;;  %v1939_v41 = vpop.f32.mrb[20].mxu1 }
 0x260   : > { %v882_v42 = vadd.f32 %v1939_v41, %v2808_v3  ;;  %v873_v43 = vpop.f32.mrb[21].mxu1 }
 0x261   : > { %v874_v44 = vadd.f32 %v2808_v3, %v873_v43  ;;  %v1940_v45 = vpop.f32.mrb[22].mxu1  ;;  %1981 = vmatprep.mubr.bf16.mxu0 %v1016_v40 }
 0x262   : > { %v885_v46 = vadd.f32 %v1940_v45, %v2808_v3  ;;  %v876_v47 = vpop.f32.mrb[23].mxu1  ;;  %1982 = vmatmul.mubr.bf16.vlgmr.msra.gmra.mrb[16].mxu0 %v1017_v39  ;;  %v990_v49 = vmax.f32 %v882_v42, 0.0 }
 0x263   : > { %v877_v48 = vadd.f32 %v2808_v3, %v876_v47  ;;  %v988_v51 = vmax.f32 %v874_v44, 0.0 }
 0x264   : > { %v991_v50 = vmax.f32 %v885_v46, 0.0 }
 0x265   : > { %v989_v52 = vmax.f32 %v877_v48, 0.0 }
 0x266   : > { %v1019_v53 = vpack.c.bf16 %v991_v50, %v990_v49 }
 0x267   : > { %v1018_v54 = vpack.c.bf16 %v989_v52, %v988_v51  ;;  %v1943_v55 = vpop.f32.mrb[24].mxu1 }
 0x268   : > { %v898_v56 = vadd.f32 %v1943_v55, %v2808_v3  ;;  %v889_v57 = vpop.f32.mrb[25].mxu1 }
 0x269   : > { %v890_v58 = vadd.f32 %v2808_v3, %v889_v57  ;;  %v1944_v59 = vpop.f32.mrb[26].mxu1  ;;  %1985 = vmatprep.mubr.bf16.mxu0 %v1018_v54 }
 0x26a   : > { %v901_v60 = vadd.f32 %v1944_v59, %v2808_v3  ;;  %v892_v61 = vpop.f32.mrb[27].mxu1  ;;  %1986 = vmatmul.mubr.bf16.gmra.mrb[20].mxu0 %v1019_v53  ;;  %v994_v63 = vmax.f32 %v898_v56, 0.0 }
 0x26b   : > { %v893_v62 = vadd.f32 %v2808_v3, %v892_v61  ;;  %v992_v2 = vmax.f32 %v890_v58, 0.0 }
 0x26c   : > { %v995_v1 = vmax.f32 %v901_v60, 0.0 }
 0x26d   : > { %v993_v4 = vmax.f32 %v893_v62, 0.0 }
 0x26e   : > { %v1021_v5 = vpack.c.bf16 %v995_v1, %v994_v63 }
 0x26f   : > { %v1020_v6 = vpack.c.bf16 %v993_v4, %v992_v2  ;;  %v1947_v7 = vpop.f32.mrb[28].mxu1 }
 0x270   : > { %v914_v8 = vadd.f32 %v1947_v7, %v2808_v3  ;;  %v905_v9 = vpop.f32.mrb[29].mxu1 }
 0x271   : > { %v906_v10 = vadd.f32 %v2808_v3, %v905_v9  ;;  %v1948_v11 = vpop.f32.mrb[30].mxu1  ;;  %1989 = vmatprep.mubr.bf16.mxu0 %v1020_v6 }
 0x272   : > { %v917_v12 = vadd.f32 %v1948_v11, %v2808_v3  ;;  %v908_v13 = vpop.f32.mrb[31].mxu1  ;;  %1990 = vmatmul.mubr.bf16.gmra.mrb[24].mxu0 %v1021_v5  ;;  %v998_v15 = vmax.f32 %v914_v8, 0.0 }
 0x273   : > { %v909_v14 = vadd.f32 %v2808_v3, %v908_v13  ;;  %v996_v17 = vmax.f32 %v906_v10, 0.0 }
 0x274   : > { %v999_v16 = vmax.f32 %v917_v12, 0.0 }
 0x275   : > { %v997_v18 = vmax.f32 %v909_v14, 0.0  ;;  %v2845_v14 = vld [vmem:[%s3227_s6] ss:$0 sm:$0xff] }
 0x276   : > { %v1023_v19 = vpack.c.bf16 %v999_v16, %v998_v15 }
 0x277   : > { %v1022_v20 = vpack.c.bf16 %v997_v18, %v996_v17  ;;  %v1951_v21 = vpop.f32.mrb[32].mxu1 }
 0x278   : > { %v930_v22 = vadd.f32 %v1951_v21, %v2808_v3  ;;  %v921_v23 = vpop.f32.mrb[33].mxu1 }
 0x279   : > { %v922_v24 = vadd.f32 %v2808_v3, %v921_v23  ;;  %v1952_v25 = vpop.f32.mrb[34].mxu1  ;;  %1993 = vmatprep.mubr.bf16.mxu0 %v1022_v20 }
 0x27a   : > { %v933_v38 = vadd.f32 %v1952_v25, %v2808_v3  ;;  %v924_v26 = vpop.f32.mrb[35].mxu1  ;;  %1994 = vmatmul.mubr.bf16.gmra.mrb[28].mxu0 %v1023_v19  ;;  %v1002_v27 = vmax.f32 %v930_v22, 0.0 }
 0x27b   : > { %v925_v0 = vadd.f32 %v2808_v3, %v924_v26  ;;  %v1000_v28 = vmax.f32 %v922_v24, 0.0 }
 0x27c   : > { %v1003_v29 = vmax.f32 %v933_v38, 0.0 }
 0x27d   : > { %v1001_v30 = vmax.f32 %v925_v0, 0.0 }
 0x27e   : > { %v1025_v31 = vpack.c.bf16 %v1003_v29, %v1002_v27 }
 0x27f   : > { %v1024_v32 = vpack.c.bf16 %v1001_v30, %v1000_v28  ;;  %v1955_v33 = vpop.f32.mrb[36].mxu1 }
 0x280   : > { %v946_v34 = vadd.f32 %v1955_v33, %v2808_v3  ;;  %v937_v35 = vpop.f32.mrb[37].mxu1 }
 0x281   : > { %v938_v36 = vadd.f32 %v2808_v3, %v937_v35  ;;  %v1956_v37 = vpop.f32.mrb[38].mxu1  ;;  %1997 = vmatprep.mubr.bf16.mxu0 %v1024_v32 }
 0x282   : > { %v949_v39 = vadd.f32 %v1956_v37, %v2808_v3  ;;  %v940_v40 = vpop.f32.mrb[39].mxu1  ;;  %1998 = vmatmul.mubr.bf16.gmra.mrb[32].mxu0 %v1025_v31  ;;  %v1006_v42 = vmax.f32 %v946_v34, 0.0 }
 0x283   : > { %v941_v41 = vadd.f32 %v2808_v3, %v940_v40  ;;  %v1004_v44 = vmax.f32 %v938_v36, 0.0 }
 0x284   : > { %v1007_v43 = vmax.f32 %v949_v39, 0.0 }
 0x285   : > { %v1005_v45 = vmax.f32 %v941_v41, 0.0 }
 0x286   : > { %v1027_v46 = vpack.c.bf16 %v1007_v43, %v1006_v42 }
 0x287   : > { %v1026_v47 = vpack.c.bf16 %v1005_v45, %v1004_v44  ;;  %v1959_v48 = vpop.f32.mrb[40].mxu1 }
 0x288   : > { %v962_v49 = vadd.f32 %v1959_v48, %v2808_v3  ;;  %v953_v50 = vpop.f32.mrb[41].mxu1 }
 0x289   : > { %v954_v51 = vadd.f32 %v2808_v3, %v953_v50  ;;  %v1960_v52 = vpop.f32.mrb[42].mxu1  ;;  %2001 = vmatprep.mubr.bf16.mxu0 %v1026_v47 }
 0x28a   : > { %v965_v53 = vadd.f32 %v1960_v52, %v2808_v3  ;;  %v956_v54 = vpop.f32.mrb[43].mxu1  ;;  %2002 = vmatmul.mubr.bf16.gmra.mrb[36].mxu0 %v1027_v46  ;;  %v1010_v56 = vmax.f32 %v962_v49, 0.0 }
 0x28b   : > { %v957_v55 = vadd.f32 %v2808_v3, %v956_v54  ;;  %v1008_v58 = vmax.f32 %v954_v51, 0.0 }
 0x28c   : > { %v1011_v57 = vmax.f32 %v965_v53, 0.0 }
 0x28d   : > { %v1009_v59 = vmax.f32 %v957_v55, 0.0 }
 0x28e   : > { %v1029_v60 = vpack.c.bf16 %v1011_v57, %v1010_v56 }
 0x28f   : > { %v1028_v61 = vpack.c.bf16 %v1009_v59, %v1008_v58  ;;  %v1963_v62 = vpop.f32.mrb[44].mxu1 }
 0x290   : > { %v978_v63 = vadd.f32 %v1963_v62, %v2808_v3  ;;  %v969_v1 = vpop.f32.mrb[45].mxu1 }
 0x291   : > { %v970_v2 = vadd.f32 %v2808_v3, %v969_v1  ;;  %v1964_v4 = vpop.f32.mrb[46].mxu1  ;;  %2005 = vmatprep.mubr.bf16.mxu0 %v1028_v61 }
 0x292   : > { %v981_v5 = vadd.f32 %v1964_v4, %v2808_v3  ;;  %v972_v6 = vpop.f32.mrb[47].mxu1  ;;  %2006 = vmatmul.mubr.bf16.gmra.mrb[40].mxu0 %v1029_v60  ;;  %v1014_v8 = vmax.f32 %v978_v63, 0.0 }
 0x293   : > { %v973_v7 = vadd.f32 %v2808_v3, %v972_v6  ;;  %v1012_v10 = vmax.f32 %v970_v2, 0.0 }
 0x294   : > { %v1015_v9 = vmax.f32 %v981_v5, 0.0 }
 0x295   : > { %v1013_v11 = vmax.f32 %v973_v7, 0.0 }
 0x296   : > { %v1031_v12 = vpack.c.bf16 %v1015_v9, %v1014_v8 }
 0x297   : > { %v1030_v13 = vpack.c.bf16 %v1013_v11, %v1012_v10 }
 0x299   : > { %2009 = vmatprep.mubr.bf16.mxu0 %v1030_v13 }
 0x29a   : > { %2010 = vmatmul.mubr.bf16.gmra.mrb[44].mxu0 %v1031_v12 }
 0x335   : > { %v1983_v15 = vpop.f32.mrb[16].mxu0 }
 0x336   : > { %v2848_v16 = vadd.f32 %v1983_v15, %v2845_v14  ;;  %v1137_v17 = vpop.f32.mrb[17].mxu0 }
 0x337   : > { %v2851_v3 = vadd.f32 %v2845_v14, %v1137_v17  ;;  %v1984_v18 = vpop.f32.mrb[18].mxu0 }
 0x338   : > { %1268 = vmax.xlane.f32.xlu1 %v2848_v16  ;;  %v1140_v19 = vpop.f32.mrb[19].mxu0  ;;  %v2856_v20 = vadd.f32 %v1984_v18, %v2845_v14 }
 0x339   : > { %1264 = vmax.xlane.f32.xlu0 %v2851_v3  ;;  %v2859_v21 = vadd.f32 %v2845_v14, %v1140_v19 }
 0x33c   : > { %1270 = vmax.xlane.f32.xlu1 %v2856_v20 }
 0x33d   : > { %v1987_v22 = vpop.f32.mrb[20].mxu0  ;;  %1266 = vmax.xlane.f32.xlu0 %v2859_v21 }
 0x33e   : > { %v2864_v23 = vadd.f32 %v1987_v22, %v2845_v14  ;;  %v1153_v24 = vpop.f32.mrb[21].mxu0 }
 0x33f   : > { %v1988_v25 = vpop.f32.mrb[22].mxu0  ;;  %v2872_v0 = vadd.f32 %v2845_v14, %v1153_v24 }
 0x340   : > { %v2867_v38 = vadd.f32 %v1988_v25, %v2845_v14  ;;  %v1156_v26 = vpop.f32.mrb[23].mxu0 }
 0x341   : > { %1276 = vmax.xlane.f32.xlu0 %v2864_v23  ;;  %v2875_v27 = vadd.f32 %v2845_v14, %v1156_v26 }
 0x342   : > { %1278 = vmax.xlane.f32.xlu1 %v2867_v38 }
 0x345   : > { %v1991_v29 = vpop.f32.mrb[24].mxu0  ;;  %1272 = vmax.xlane.f32.xlu0 %v2872_v0 }
 0x346   : > { %v2879_v28 = vadd.f32 %v1991_v29, %v2845_v14  ;;  %v1169_v30 = vpop.f32.mrb[25].mxu0  ;;  %1274 = vmax.xlane.f32.xlu1 %v2875_v27 }
 0x347   : > { %v1992_v31 = vpop.f32.mrb[26].mxu0  ;;  %v2888_v34 = vadd.f32 %v2845_v14, %v1169_v30 }
 0x348   : > { %v2883_v32 = vadd.f32 %v1992_v31, %v2845_v14  ;;  %v1172_v33 = vpop.f32.mrb[27].mxu0 }
 0x349   : > { %1284 = vmax.xlane.f32.xlu0 %v2879_v28  ;;  %v2891_v35 = vadd.f32 %v2845_v14, %v1172_v33 }
 0x34a   : > { %1286 = vmax.xlane.f32.xlu1 %v2883_v32 }
 0x34d   : > { %v1995_v36 = vpop.f32.mrb[28].mxu0  ;;  %1280 = vmax.xlane.f32.xlu0 %v2888_v34 }
 0x34e   : > { %v2895_v37 = vadd.f32 %v1995_v36, %v2845_v14  ;;  %v1185_v39 = vpop.f32.mrb[29].mxu0  ;;  %1282 = vmax.xlane.f32.xlu1 %v2891_v35 }
 0x34f   : > { %v1996_v40 = vpop.f32.mrb[30].mxu0  ;;  %v2904_v43 = vadd.f32 %v2845_v14, %v1185_v39 }
 0x350   : > { %v2899_v41 = vadd.f32 %v1996_v40, %v2845_v14  ;;  %v1188_v42 = vpop.f32.mrb[31].mxu0 }
 0x351   : > { %1292 = vmax.xlane.f32.xlu0 %v2895_v37  ;;  %v2907_v44 = vadd.f32 %v2845_v14, %v1188_v42 }
 0x352   : > { %1294 = vmax.xlane.f32.xlu1 %v2899_v41 }
 0x355   : > { %v1999_v45 = vpop.f32.mrb[32].mxu0  ;;  %1288 = vmax.xlane.f32.xlu0 %v2904_v43 }
 0x356   : > { %v2911_v46 = vadd.f32 %v1999_v45, %v2845_v14  ;;  %v1201_v47 = vpop.f32.mrb[33].mxu0  ;;  %1290 = vmax.xlane.f32.xlu1 %v2907_v44 }
 0x357   : > { %v2000_v48 = vpop.f32.mrb[34].mxu0  ;;  %v2920_v51 = vadd.f32 %v2845_v14, %v1201_v47 }
 0x358   : > { %v2915_v49 = vadd.f32 %v2000_v48, %v2845_v14  ;;  %v1204_v50 = vpop.f32.mrb[35].mxu0 }
 0x359   : > { %1300 = vmax.xlane.f32.xlu0 %v2911_v46  ;;  %v2923_v52 = vadd.f32 %v2845_v14, %v1204_v50 }
 0x35a   : > { %1302 = vmax.xlane.f32.xlu1 %v2915_v49 }
 0x35d   : > { %v2003_v53 = vpop.f32.mrb[36].mxu0  ;;  %1296 = vmax.xlane.f32.xlu0 %v2920_v51 }
 0x35e   : > { %v2927_v54 = vadd.f32 %v2003_v53, %v2845_v14  ;;  %v1217_v55 = vpop.f32.mrb[37].mxu0  ;;  %1298 = vmax.xlane.f32.xlu1 %v2923_v52 }
 0x35f   : > { %v2004_v56 = vpop.f32.mrb[38].mxu0  ;;  %v2936_v59 = vadd.f32 %v2845_v14, %v1217_v55 }
 0x360   : > { %v2931_v57 = vadd.f32 %v2004_v56, %v2845_v14  ;;  %v1220_v58 = vpop.f32.mrb[39].mxu0 }
 0x361   : > { %1308 = vmax.xlane.f32.xlu0 %v2927_v54  ;;  %v2939_v60 = vadd.f32 %v2845_v14, %v1220_v58 }
 0x362   : > { %1310 = vmax.xlane.f32.xlu1 %v2931_v57 }
 0x365   : > { %v2007_v61 = vpop.f32.mrb[40].mxu0  ;;  %1304 = vmax.xlane.f32.xlu0 %v2936_v59 }
 0x366   : > { %v2943_v62 = vadd.f32 %v2007_v61, %v2845_v14  ;;  %v1233_v63 = vpop.f32.mrb[41].mxu0  ;;  %1306 = vmax.xlane.f32.xlu1 %v2939_v60 }
 0x367   : > { %v2008_v1 = vpop.f32.mrb[42].mxu0  ;;  %v2952_v5 = vadd.f32 %v2845_v14, %v1233_v63 }
 0x368   : > { %v2947_v2 = vadd.f32 %v2008_v1, %v2845_v14  ;;  %v1236_v4 = vpop.f32.mrb[43].mxu0 }
 0x369   : > { %1316 = vmax.xlane.f32.xlu0 %v2943_v62  ;;  %v2955_v6 = vadd.f32 %v2845_v14, %v1236_v4 }
 0x36a   : > { %1318 = vmax.xlane.f32.xlu1 %v2947_v2 }
 0x36d   : > { %v2011_v7 = vpop.f32.mrb[44].mxu0  ;;  %1312 = vmax.xlane.f32.xlu0 %v2952_v5 }
 0x36e   : > { %v1249_v8 = vpop.f32.mrb[45].mxu0  ;;  %1314 = vmax.xlane.f32.xlu1 %v2955_v6  ;;  %v2967_v13 = vadd.f32 %v2011_v7, %v2845_v14 }
 0x36f   : > { %v2960_v9 = vadd.f32 %v2845_v14, %v1249_v8  ;;  %v2012_v10 = vpop.f32.mrb[46].mxu0 }
 0x370   : > { %v1252_v11 = vpop.f32.mrb[47].mxu0  ;;  %v2971_v15 = vadd.f32 %v2012_v10, %v2845_v14 }
 0x371   : > { %v2963_v12 = vadd.f32 %v2845_v14, %v1252_v11  ;;  %1320 = vmax.xlane.f32.xlu0 %v2960_v9 }
 0x373   : > { %1322 = vmax.xlane.f32.xlu1 %v2963_v12 }
 0x375   : > { %1324 = vmax.xlane.f32.xlu0 %v2967_v13 }
 0x377   : > { %1326 = vmax.xlane.f32.xlu1 %v2971_v15 }
 0x3c5   : > { %v1269_v17 = vpop.xlane.xlu1 %1268 }
 0x3c6   : > { %v2976_v18 = vsub.f32 %v2848_v16, %v1269_v17  ;;  %v1265_v19 = vpop.xlane.xlu0 %1264 }
 0x3c7   : > { %v2979_v22 = vsub.f32 %v2851_v3, %v1265_v19 }
 0x3c8   : > { %v1364_v24 = vmul.f32 1.442695, %v2976_v18 }
 0x3c9   : > { %v1360_v25 = vmul.f32 1.442695, %v2979_v22  ;;  %v1271_v26 = vpop.xlane.xlu1 %1270 }
 0x3ca   : > { %2150 = vpow2.f32 %v1364_v24  ;;  %v2984_v14 = vsub.f32 %v2856_v20, %v1271_v26  ;;  %v1267_v29 = vpop.xlane.xlu0 %1266 }
 0x3cb   : > { %v2987_v30 = vsub.f32 %v2859_v21, %v1267_v29  ;;  %2152 = vpow2.f32 %v1360_v25 }
 0x3cc   : > { %v1366_v16 = vmul.f32 1.442695, %v2984_v14 }
 0x3cd   : > { %v1362_v3 = vmul.f32 1.442695, %v2987_v30 }
 0x3ce   : > { %2154 = vpow2.f32 %v1366_v16  ;;  %v1277_v31 = vpop.xlane.xlu0 %1276 }
 0x3cf   : > { %v2992_v33 = vsub.f32 %v2864_v23, %v1277_v31  ;;  %v1279_v36 = vpop.xlane.xlu1 %1278  ;;  %2156 = vpow2.f32 %v1362_v3 }
 0x3d0   : > { %v2995_v39 = vsub.f32 %v2867_v38, %v1279_v36 }
 0x3d1   : > { %v1372_v20 = vmul.f32 1.442695, %v2992_v33 }
 0x3d2   : > { %v1374_v21 = vmul.f32 1.442695, %v2995_v39  ;;  %v1273_v40 = vpop.xlane.xlu0 %1272 }
 0x3d3   : > { %2158 = vpow2.f32 %v1372_v20  ;;  %v3000_v42 = vsub.f32 %v2872_v0, %v1273_v40  ;;  %v1275_v45 = vpop.xlane.xlu1 %1274 }
 0x3d4   : > { %v2151_v47 = vpop.eup %2150  ;;  %v3003_v48 = vsub.f32 %v2875_v27, %v1275_v45  ;;  %2160 = vpow2.f32 %v1374_v21 }
 0x3d5   : > { %v1368_v23 = vmul.f32 1.442695, %v3000_v42  ;;  %1428 = vadd.xlane.f32.xlu0 %v2151_v47  ;;  %v2153_v53 = vpop.eup %2152 }
 0x3d6   : > { %v1370_v38 = vmul.f32 1.442695, %v3003_v48  ;;  %v1285_v50 = vpop.xlane.xlu0 %1284 }
 0x3d7   : > { %2162 = vpow2.f32 %v1368_v23  ;;  %v3008_v55 = vsub.f32 %v2879_v28, %v1285_v50  ;;  %v1287_v56 = vpop.xlane.xlu1 %1286 }
 0x3d8   : > { %v2155_v0 = vpop.eup %2154  ;;  %v3011_v58 = vsub.f32 %v2883_v32, %v1287_v56  ;;  %2164 = vpow2.f32 %v1370_v38 }
 0x3d9   : > { %v1380_v27 = vmul.f32 1.442695, %v3008_v55  ;;  %1430 = vadd.xlane.f32.xlu1 %v2155_v0  ;;  %1424 = vadd.xlane.f32.xlu0 %v2153_v53  ;;  %v2157_v28 = vpop.eup %2156 }
 0x3da   : > { %v1382_v61 = vmul.f32 1.442695, %v3011_v58  ;;  %v1281_v63 = vpop.xlane.xlu0 %1280 }
 0x3db   : > { %2166 = vpow2.f32 %v1380_v27  ;;  %v3016_v1 = vsub.f32 %v2888_v34, %v1281_v63  ;;  %v1283_v4 = vpop.xlane.xlu1 %1282 }
 0x3dc   : > { %v3019_v7 = vsub.f32 %v2891_v35, %v1283_v4  ;;  %2168 = vpow2.f32 %v1382_v61 }
 0x3dd   : > { %v2159_v8 = vpop.eup %2158  ;;  %v1376_v32 = vmul.f32 1.442695, %v3016_v1  ;;  %1426 = vadd.xlane.f32.xlu1 %v2157_v28 }
 0x3de   : > { %v1378_v10 = vmul.f32 1.442695, %v3019_v7  ;;  %1436 = vadd.xlane.f32.xlu0 %v2159_v8  ;;  %v1293_v11 = vpop.xlane.xlu0 %1292  ;;  %v2161_v19 = vpop.eup %2160 }
 0x3df   : > { %2170 = vpow2.f32 %v1376_v32  ;;  %v3024_v17 = vsub.f32 %v2895_v37, %v1293_v11  ;;  %v1295_v34 = vpop.xlane.xlu1 %1294 }
 0x3e0   : > { %v3027_v24 = vsub.f32 %v2899_v41, %v1295_v34  ;;  %2172 = vpow2.f32 %v1378_v10 }
 0x3e1   : > { %v2163_v35 = vpop.eup %2162  ;;  %v1388_v25 = vmul.f32 1.442695, %v3024_v17  ;;  %1438 = vadd.xlane.f32.xlu1 %v2161_v19 }
 0x3e2   : > { %v1390_v26 = vmul.f32 1.442695, %v3027_v24  ;;  %1432 = vadd.xlane.f32.xlu0 %v2163_v35  ;;  %v1289_v29 = vpop.xlane.xlu0 %1288  ;;  %v2165_v3 = vpop.eup %2164 }
 0x3e3   : > { %2174 = vpow2.f32 %v1388_v25  ;;  %v3032_v16 = vsub.f32 %v2904_v43, %v1289_v29  ;;  %v1291_v37 = vpop.xlane.xlu1 %1290 }
 0x3e4   : > { %v3035_v31 = vsub.f32 %v2907_v44, %v1291_v37  ;;  %2176 = vpow2.f32 %v1390_v26 }
 0x3e5   : > { %v2167_v41 = vpop.eup %2166  ;;  %v1384_v36 = vmul.f32 1.442695, %v3032_v16  ;;  %1434 = vadd.xlane.f32.xlu1 %v2165_v3 }
 0x3e6   : > { %v1386_v20 = vmul.f32 1.442695, %v3035_v31  ;;  %1444 = vadd.xlane.f32.xlu0 %v2167_v41  ;;  %v1301_v21 = vpop.xlane.xlu0 %1300  ;;  %v2169_v45 = vpop.eup %2168 }
 0x3e7   : > { %2178 = vpow2.f32 %v1384_v36  ;;  %v3040_v40 = vsub.f32 %v2911_v46, %v1301_v21  ;;  %v1303_v43 = vpop.xlane.xlu1 %1302 }
 0x3e8   : > { %v3043_v47 = vsub.f32 %v2915_v49, %v1303_v43  ;;  %2180 = vpow2.f32 %v1386_v20 }
 0x3e9   : > { %v2171_v44 = vpop.eup %2170  ;;  %v1396_v23 = vmul.f32 1.442695, %v3040_v40  ;;  %1446 = vadd.xlane.f32.xlu1 %v2169_v45 }
 0x3ea   : > { %v1398_v38 = vmul.f32 1.442695, %v3043_v47  ;;  %1440 = vadd.xlane.f32.xlu0 %v2171_v44  ;;  %v1297_v50 = vpop.xlane.xlu0 %1296  ;;  %v2173_v56 = vpop.eup %2172 }
 0x3eb   : > { %2182 = vpow2.f32 %v1396_v23  ;;  %v3048_v53 = vsub.f32 %v2920_v51, %v1297_v50  ;;  %v1299_v46 = vpop.xlane.xlu1 %1298 }
 0x3ec   : > { %v3051_v0 = vsub.f32 %v2923_v52, %v1299_v46  ;;  %2184 = vpow2.f32 %v1398_v38 }
 0x3ed   : > { %v2175_v49 = vpop.eup %2174  ;;  %v1392_v27 = vmul.f32 1.442695, %v3048_v53  ;;  %1442 = vadd.xlane.f32.xlu1 %v2173_v56 }
 0x3ee   : > { %v1394_v61 = vmul.f32 1.442695, %v3051_v0  ;;  %1452 = vadd.xlane.f32.xlu0 %v2175_v49  ;;  %v1309_v63 = vpop.xlane.xlu0 %1308  ;;  %v2177_v28 = vpop.eup %2176 }
 0x3ef   : > { %2186 = vpow2.f32 %v1392_v27  ;;  %v3056_v4 = vsub.f32 %v2927_v54, %v1309_v63  ;;  %v1311_v51 = vpop.xlane.xlu1 %1310 }
 0x3f0   : > { %v3059_v8 = vsub.f32 %v2931_v57, %v1311_v51  ;;  %2188 = vpow2.f32 %v1394_v61 }
 0x3f1   : > { %v2179_v52 = vpop.eup %2178  ;;  %v1404_v32 = vmul.f32 1.442695, %v3056_v4  ;;  %1454 = vadd.xlane.f32.xlu1 %v2177_v28 }
 0x3f2   : > { %v1406_v10 = vmul.f32 1.442695, %v3059_v8  ;;  %1448 = vadd.xlane.f32.xlu0 %v2179_v52  ;;  %v1305_v11 = vpop.xlane.xlu0 %1304  ;;  %v2181_v19 = vpop.eup %2180 }
 0x3f3   : > { %2190 = vpow2.f32 %v1404_v32  ;;  %v3064_v34 = vsub.f32 %v2936_v59, %v1305_v11  ;;  %v1307_v54 = vpop.xlane.xlu1 %1306 }
 0x3f4   : > { %v3067_v35 = vsub.f32 %v2939_v60, %v1307_v54  ;;  %2192 = vpow2.f32 %v1406_v10 }
 0x3f5   : > { %v2183_v57 = vpop.eup %2182  ;;  %v1400_v25 = vmul.f32 1.442695, %v3064_v34  ;;  %1450 = vadd.xlane.f32.xlu1 %v2181_v19 }
 0x3f6   : > { %v1402_v26 = vmul.f32 1.442695, %v3067_v35  ;;  %1460 = vadd.xlane.f32.xlu0 %v2183_v57  ;;  %v1317_v29 = vpop.xlane.xlu0 %1316  ;;  %v2185_v3 = vpop.eup %2184 }
 0x3f7   : > { %2194 = vpow2.f32 %v1400_v25  ;;  %v3072_v37 = vsub.f32 %v2943_v62, %v1317_v29  ;;  %v1319_v59 = vpop.xlane.xlu1 %1318 }
 0x3f8   : > { %v3075_v41 = vsub.f32 %v2947_v2, %v1319_v59  ;;  %2196 = vpow2.f32 %v1402_v26 }
 0x3f9   : > { %v2187_v60 = vpop.eup %2186  ;;  %v1412_v36 = vmul.f32 1.442695, %v3072_v37  ;;  %1462 = vadd.xlane.f32.xlu1 %v2185_v3 }
 0x3fa   : > { %v1414_v20 = vmul.f32 1.442695, %v3075_v41  ;;  %1456 = vadd.xlane.f32.xlu0 %v2187_v60  ;;  %v1313_v21 = vpop.xlane.xlu0 %1312  ;;  %v2189_v45 = vpop.eup %2188 }
 0x3fb   : > { %2198 = vpow2.f32 %v1412_v36  ;;  %v3080_v43 = vsub.f32 %v2952_v5, %v1313_v21  ;;  %v1315_v62 = vpop.xlane.xlu1 %1314 }
 0x3fc   : > { %v3083_v44 = vsub.f32 %v2955_v6, %v1315_v62  ;;  %2200 = vpow2.f32 %v1414_v20 }
 0x3fd   : > { %v2191_v2 = vpop.eup %2190  ;;  %v1408_v23 = vmul.f32 1.442695, %v3080_v43  ;;  %1458 = vadd.xlane.f32.xlu1 %v2189_v45 }
 0x3fe   : > { %v1410_v38 = vmul.f32 1.442695, %v3083_v44  ;;  %1468 = vadd.xlane.f32.xlu0 %v2191_v2  ;;  %v1321_v50 = vpop.xlane.xlu0 %1320  ;;  %v2193_v5 = vpop.eup %2192 }
 0x3ff   : > { %2202 = vpow2.f32 %v1408_v23  ;;  %v3088_v46 = vsub.f32 %v2960_v9, %v1321_v50 }
 0x400   : > { %v1323_v56 = vpop.xlane.xlu1 %1322  ;;  %2204 = vpow2.f32 %v1410_v38 }
 0x401   : > { %v2195_v49 = vpop.eup %2194  ;;  %v1416_v27 = vmul.f32 1.442695, %v3088_v46  ;;  %v3092_v6 = vsub.f32 %v2963_v12, %v1323_v56  ;;  %1470 = vadd.xlane.f32.xlu1 %v2193_v5 }
 0x402   : > { %1464 = vadd.xlane.f32.xlu0 %v2195_v49  ;;  %v1325_v61 = vpop.xlane.xlu0 %1324  ;;  %v2197_v9 = vpop.eup %2196 }
 0x403   : > { %2206 = vpow2.f32 %v1416_v27  ;;  %v1418_v63 = vmul.f32 1.442695, %v3092_v6  ;;  %v3096_v51 = vsub.f32 %v2967_v13, %v1325_v61 }
 0x404   : > { %v1327_v28 = vpop.xlane.xlu1 %1326 }
 0x405   : > { %v2199_v52 = vpop.eup %2198  ;;  %2208 = vpow2.f32 %v1418_v63  ;;  %v1420_v32 = vmul.f32 1.442695, %v3096_v51  ;;  %v3100_v10 = vsub.f32 %v2971_v15, %v1327_v28  ;;  %1466 = vadd.xlane.f32.xlu1 %v2197_v9 }
 0x406   : > { %1476 = vadd.xlane.f32.xlu0 %v2199_v52  ;;  %v2201_v11 = vpop.eup %2200 }
 0x407   : > { %2210 = vpow2.f32 %v1420_v32  ;;  %v1422_v12 = vmul.f32 1.442695, %v3100_v10 }
 0x409   : > { %v2203_v54 = vpop.eup %2202  ;;  %2212 = vpow2.f32 %v1422_v12  ;;  %1478 = vadd.xlane.f32.xlu1 %v2201_v11 }
 0x40a   : > { %1472 = vadd.xlane.f32.xlu0 %v2203_v54  ;;  %v2205_v13 = vpop.eup %2204 }
 0x40d   : > { %v2207_v19 = vpop.eup %2206  ;;  %1474 = vadd.xlane.f32.xlu1 %v2205_v13 }
 0x40e   : > { %1480 = vadd.xlane.f32.xlu0 %v2207_v19 }
 0x40f   : > { %v2209_v57 = vpop.eup %2208 }
 0x411   : > { %v2211_v25 = vpop.eup %2210  ;;  %1482 = vadd.xlane.f32.xlu1 %v2209_v57 }
 0x412   : > { %1484 = vadd.xlane.f32.xlu0 %v2211_v25 }
 0x413   : > { %v2213_v15 = vpop.eup %2212 }
 0x415   : > { %1486 = vadd.xlane.f32.xlu1 %v2213_v15 }
 0x462   : > { %v1429_v26 = vpop.xlane.xlu0 %1428 }
 0x463   : > { %2214 = vlog2.f32 %v1429_v26 }
 0x466   : > { %v1431_v29 = vpop.xlane.xlu1 %1430  ;;  %v1425_v59 = vpop.xlane.xlu0 %1424 }
 0x467   : > { %2216 = vlog2.f32 %v1431_v29 }
 0x468   : > { %2218 = vlog2.f32 %v1425_v59 }
 0x46a   : > { %v1427_v3 = vpop.xlane.xlu1 %1426 }
 0x46b   : > { %2220 = vlog2.f32 %v1427_v3  ;;  %v1437_v60 = vpop.xlane.xlu0 %1436 }
 0x46c   : > { %2222 = vlog2.f32 %v1437_v60 }
 0x46d   : > { %v2215_v36 = vpop.eup %2214 }
 0x46e   : > { %v1493_v20 = vmul.f32 0.6931472, %v2215_v36  ;;  %v1439_v21 = vpop.xlane.xlu1 %1438 }
 0x46f   : > { %2224 = vlog2.f32 %v1439_v21  ;;  %v1433_v62 = vpop.xlane.xlu0 %1432 }
 0x470   : > { %v1554_v45 = vsub.f32 %v2976_v18, %v1493_v20  ;;  %2226 = vlog2.f32 %v1433_v62 }
 0x471   : > { %v2217_v2 = vpop.eup %2216 }
 0x472   : > { %v2219_v23 = vpop.eup %2218  ;;  %1586 = vst [vmem:[%s3105_s12 + $0x10] sm:$0xff] %v1554_v45  ;;  %v1495_v38 = vmul.f32 0.6931472, %v2217_v2  ;;  %v1435_v50 = vpop.xlane.xlu1 %1434 }
 0x473   : > { %v1489_v5 = vmul.f32 0.6931472, %v2219_v23  ;;  %2228 = vlog2.f32 %v1435_v50  ;;  %v1445_v56 = vpop.xlane.xlu0 %1444 }
 0x474   : > { %v1555_v49 = vsub.f32 %v2984_v14, %v1495_v38  ;;  %2230 = vlog2.f32 %v1445_v56 }
 0x475   : > { %v2221_v27 = vpop.eup %2220  ;;  %v1552_v18 = vsub.f32 %v2979_v22, %v1489_v5 }
 0x476   : > { %v2223_v61 = vpop.eup %2222  ;;  %1587 = vst [vmem:[%s3105_s12 + $0x18] sm:$0xff] %v1555_v49  ;;  %v1491_v63 = vmul.f32 0.6931472, %v2221_v27  ;;  %v1447_v9 = vpop.xlane.xlu1 %1446 }
 0x477   : > { %1584 = vst [vmem:[%s3105_s12] sm:$0xff] %v1552_v18  ;;  %v1501_v28 = vmul.f32 0.6931472, %v2223_v61  ;;  %2232 = vlog2.f32 %v1447_v9  ;;  %v1441_v52 = vpop.xlane.xlu0 %1440 }
 0x478   : > { %v1553_v32 = vsub.f32 %v2987_v30, %v1491_v63  ;;  %2234 = vlog2.f32 %v1441_v52 }
 0x479   : > { %v2225_v12 = vpop.eup %2224  ;;  %v1558_v14 = vsub.f32 %v2992_v33, %v1501_v28 }
 0x47a   : > { %v2227_v11 = vpop.eup %2226  ;;  %1585 = vst [vmem:[%s3105_s12 + $0x8] sm:$0xff] %v1553_v32  ;;  %v1503_v22 = vmul.f32 0.6931472, %v2225_v12  ;;  %v1443_v54 = vpop.xlane.xlu1 %1442 }
 0x47b   : > { %1590 = vst [vmem:[%s3105_s12 + $0x30] sm:$0xff] %v1558_v14  ;;  %v1497_v13 = vmul.f32 0.6931472, %v2227_v11  ;;  %2236 = vlog2.f32 %v1443_v54  ;;  %v1453_v19 = vpop.xlane.xlu0 %1452 }
 0x47c   : > { %v1559_v57 = vsub.f32 %v2995_v39, %v1503_v22  ;;  %2238 = vlog2.f32 %v1453_v19 }
 0x47d   : > { %v2229_v25 = vpop.eup %2228  ;;  %v1556_v30 = vsub.f32 %v3000_v42, %v1497_v13 }
 0x47e   : > { %v2231_v15 = vpop.eup %2230  ;;  %1591 = vst [vmem:[%s3105_s12 + $0x38] sm:$0xff] %v1559_v57  ;;  %v1499_v33 = vmul.f32 0.6931472, %v2229_v25  ;;  %v1455_v26 = vpop.xlane.xlu1 %1454 }
 0x47f   : > { %1588 = vst [vmem:[%s3105_s12 + $0x20] sm:$0xff] %v1556_v30  ;;  %v1509_v29 = vmul.f32 0.6931472, %v2231_v15  ;;  %2240 = vlog2.f32 %v1455_v26  ;;  %v1449_v59 = vpop.xlane.xlu0 %1448 }
 0x480   : > { %v1557_v3 = vsub.f32 %v3003_v48, %v1499_v33  ;;  %2242 = vlog2.f32 %v1449_v59 }
 0x481   : > { %v2233_v60 = vpop.eup %2232  ;;  %v1562_v39 = vsub.f32 %v3008_v55, %v1509_v29 }
 0x482   : > { %v2235_v36 = vpop.eup %2234  ;;  %1589 = vst [vmem:[%s3105_s12 + $0x28] sm:$0xff] %v1557_v3  ;;  %v1511_v42 = vmul.f32 0.6931472, %v2233_v60  ;;  %v1451_v20 = vpop.xlane.xlu1 %1450 }
 0x483   : > { %1594 = vst [vmem:[%s3105_s12 + $0x50] sm:$0xff] %v1562_v39  ;;  %v1505_v21 = vmul.f32 0.6931472, %v2235_v36  ;;  %2244 = vlog2.f32 %v1451_v20  ;;  %v1461_v62 = vpop.xlane.xlu0 %1460 }
 0x484   : > { %v1563_v45 = vsub.f32 %v3011_v58, %v1511_v42  ;;  %2246 = vlog2.f32 %v1461_v62 }
 0x485   : > { %v2237_v2 = vpop.eup %2236  ;;  %v1560_v48 = vsub.f32 %v3016_v1, %v1505_v21 }
 0x486   : > { %v2239_v23 = vpop.eup %2238  ;;  %1595 = vst [vmem:[%s3105_s12 + $0x58] sm:$0xff] %v1563_v45  ;;  %v1507_v55 = vmul.f32 0.6931472, %v2237_v2  ;;  %v1463_v38 = vpop.xlane.xlu1 %1462 }
 0x487   : > { %1592 = vst [vmem:[%s3105_s12 + $0x40] sm:$0xff] %v1560_v48  ;;  %v1517_v50 = vmul.f32 0.6931472, %v2239_v23  ;;  %2248 = vlog2.f32 %v1463_v38  ;;  %v1457_v5 = vpop.xlane.xlu0 %1456 }
 0x488   : > { %v1561_v56 = vsub.f32 %v3019_v7, %v1507_v55  ;;  %2250 = vlog2.f32 %v1457_v5 }
 0x489   : > { %v2241_v49 = vpop.eup %2240  ;;  %v1566_v58 = vsub.f32 %v3024_v17, %v1517_v50 }
 0x48a   : > { %v2243_v27 = vpop.eup %2242  ;;  %1593 = vst [vmem:[%s3105_s12 + $0x48] sm:$0xff] %v1561_v56  ;;  %v1519_v1 = vmul.f32 0.6931472, %v2241_v49  ;;  %v1459_v18 = vpop.xlane.xlu1 %1458 }
 0x48b   : > { %1598 = vst [vmem:[%s3105_s12 + $0x70] sm:$0xff] %v1566_v58  ;;  %v1513_v61 = vmul.f32 0.6931472, %v2243_v27  ;;  %2252 = vlog2.f32 %v1459_v18  ;;  %v1469_v63 = vpop.xlane.xlu0 %1468 }
 0x48c   : > { %v1567_v9 = vsub.f32 %v3027_v24, %v1519_v1  ;;  %2254 = vlog2.f32 %v1469_v63 }
 0x48d   : > { %v2245_v28 = vpop.eup %2244  ;;  %v1564_v7 = vsub.f32 %v3032_v16, %v1513_v61 }
 0x48e   : > { %v2247_v52 = vpop.eup %2246  ;;  %1599 = vst [vmem:[%s3105_s12 + $0x78] sm:$0xff] %v1567_v9  ;;  %v1515_v17 = vmul.f32 0.6931472, %v2245_v28  ;;  %v1471_v32 = vpop.xlane.xlu1 %1470 }
 0x48f   : > { %1596 = vst [vmem:[%s3105_s12 + $0x60] sm:$0xff] %v1564_v7  ;;  %v1525_v12 = vmul.f32 0.6931472, %v2247_v52  ;;  %2256 = vlog2.f32 %v1471_v32  ;;  %v1465_v14 = vpop.xlane.xlu0 %1464 }
 0x490   : > { %v1565_v11 = vsub.f32 %v3035_v31, %v1515_v17  ;;  %2258 = vlog2.f32 %v1465_v14 }
 0x491   : > { %v2249_v22 = vpop.eup %2248  ;;  %v1570_v24 = vsub.f32 %v3040_v40, %v1525_v12 }
 0x492   : > { %v2251_v54 = vpop.eup %2250  ;;  %1597 = vst [vmem:[%s3105_s12 + $0x68] sm:$0xff] %v1565_v11  ;;  %v1527_v16 = vmul.f32 0.6931472, %v2249_v22  ;;  %v1467_v13 = vpop.xlane.xlu1 %1466 }
 0x493   : > { %1602 = vst [vmem:[%s3105_s12 + $0x90] sm:$0xff] %v1570_v24  ;;  %v1521_v19 = vmul.f32 0.6931472, %v2251_v54  ;;  %2260 = vlog2.f32 %v1467_v13  ;;  %v1477_v57 = vpop.xlane.xlu0 %1476 }
 0x494   : > { %v1571_v25 = vsub.f32 %v3043_v47, %v1527_v16  ;;  %2262 = vlog2.f32 %v1477_v57 }
 0x495   : > { %v2253_v30 = vpop.eup %2252  ;;  %v1568_v31 = vsub.f32 %v3048_v53, %v1521_v19 }
 0x496   : > { %v2255_v15 = vpop.eup %2254  ;;  %1603 = vst [vmem:[%s3105_s12 + $0x98] sm:$0xff] %v1571_v25  ;;  %v1523_v40 = vmul.f32 0.6931472, %v2253_v30  ;;  %v1479_v33 = vpop.xlane.xlu1 %1478 }
 0x497   : > { %1600 = vst [vmem:[%s3105_s12 + $0x80] sm:$0xff] %v1568_v31  ;;  %v1533_v26 = vmul.f32 0.6931472, %v2255_v15  ;;  %2264 = vlog2.f32 %v1479_v33  ;;  %v1473_v29 = vpop.xlane.xlu0 %1472 }
 0x498   : > { %v1569_v59 = vsub.f32 %v3051_v0, %v1523_v40  ;;  %2266 = vlog2.f32 %v1473_v29 }
 0x499   : > { %v2257_v3 = vpop.eup %2256  ;;  %v1574_v47 = vsub.f32 %v3056_v4, %v1533_v26 }
 0x49a   : > { %v2259_v60 = vpop.eup %2258  ;;  %1601 = vst [vmem:[%s3105_s12 + $0x88] sm:$0xff] %v1569_v59  ;;  %v1535_v53 = vmul.f32 0.6931472, %v2257_v3  ;;  %v1475_v39 = vpop.xlane.xlu1 %1474 }
 0x49b   : > { %1606 = vst [vmem:[%s3105_s12 + $0xb0] sm:$0xff] %v1574_v47  ;;  %v1529_v36 = vmul.f32 0.6931472, %v2259_v60  ;;  %2268 = vlog2.f32 %v1475_v39  ;;  %v1481_v42 = vpop.xlane.xlu0 %1480 }
 0x49c   : > { %v1575_v20 = vsub.f32 %v3059_v8, %v1535_v53  ;;  %2270 = vlog2.f32 %v1481_v42 }
 0x49d   : > { %v2261_v21 = vpop.eup %2260  ;;  %v1572_v0 = vsub.f32 %v3064_v34, %v1529_v36 }
 0x49e   : > { %v2263_v62 = vpop.eup %2262  ;;  %1607 = vst [vmem:[%s3105_s12 + $0xb8] sm:$0xff] %v1575_v20  ;;  %v1531_v4 = vmul.f32 0.6931472, %v2261_v21  ;;  %v1483_v45 = vpop.xlane.xlu1 %1482 }
 0x49f   : > { %1604 = vst [vmem:[%s3105_s12 + $0xa0] sm:$0xff] %v1572_v0  ;;  %v1541_v2 = vmul.f32 0.6931472, %v2263_v62  ;;  %2272 = vlog2.f32 %v1483_v45  ;;  %v1485_v48 = vpop.xlane.xlu0 %1484 }
 0x4a0   : > { %v1573_v23 = vsub.f32 %v3067_v35, %v1531_v4  ;;  %2274 = vlog2.f32 %v1485_v48 }
 0x4a1   : > { %v2265_v8 = vpop.eup %2264  ;;  %v1578_v55 = vsub.f32 %v3072_v37, %v1541_v2 }
 0x4a2   : > { %v2267_v38 = vpop.eup %2266  ;;  %1605 = vst [vmem:[%s3105_s12 + $0xa8] sm:$0xff] %v1573_v23  ;;  %v1543_v34 = vmul.f32 0.6931472, %v2265_v8  ;;  %v1487_v50 = vpop.xlane.xlu1 %1486 }
 0x4a3   : > { %1610 = vst [vmem:[%s3105_s12 + $0xd0] sm:$0xff] %v1578_v55  ;;  %v1537_v5 = vmul.f32 0.6931472, %v2267_v38  ;;  %2276 = vlog2.f32 %v1487_v50 }
 0x4a4   : > { %v1579_v56 = vsub.f32 %v3075_v41, %v1543_v34 }
 0x4a5   : > { %v2269_v49 = vpop.eup %2268  ;;  %v1576_v35 = vsub.f32 %v3080_v43, %v1537_v5 }
 0x4a6   : > { %v2271_v58 = vpop.eup %2270  ;;  %1611 = vst [vmem:[%s3105_s12 + $0xd8] sm:$0xff] %v1579_v56  ;;  %v1539_v27 = vmul.f32 0.6931472, %v2269_v49 }
 0x4a7   : > { %1608 = vst [vmem:[%s3105_s12 + $0xc0] sm:$0xff] %v1576_v35  ;;  %v1545_v37 = vmul.f32 0.6931472, %v2271_v58 }
 0x4a8   : > { %v1577_v1 = vsub.f32 %v3083_v44, %v1539_v27 }
 0x4a9   : > { %v2273_v18 = vpop.eup %2272  ;;  %v1580_v61 = vsub.f32 %v3088_v46, %v1545_v37 }
 0x4aa   : > { %v2275_v63 = vpop.eup %2274  ;;  %1609 = vst [vmem:[%s3105_s12 + $0xc8] sm:$0xff] %v1577_v1  ;;  %v1547_v41 = vmul.f32 0.6931472, %v2273_v18 }
 0x4ab   : > { %1612 = vst [vmem:[%s3105_s12 + $0xe0] sm:$0xff] %v1580_v61  ;;  %v1549_v43 = vmul.f32 0.6931472, %v2275_v63 }
 0x4ac   : > { %v1581_v9 = vsub.f32 %v3092_v6, %v1547_v41 }
 0x4ad   : > { %v2277_v28 = vpop.eup %2276  ;;  %v1582_v7 = vsub.f32 %v3096_v51, %v1549_v43 }
 0x4ae   : > { %1613 = vst [vmem:[%s3105_s12 + $0xe8] sm:$0xff] %v1581_v9  ;;  %v1551_v44 = vmul.f32 0.6931472, %v2277_v28 }
 0x4af   : > { %1614 = vst [vmem:[%s3105_s12 + $0xf0] sm:$0xff] %v1582_v7 }
 0x4b0   : > { %v1583_v46 = vsub.f32 %v3100_v10, %v1551_v44 }
 0x4b2   : > { %1615 = vst [vmem:[%s3105_s12 + $0xf8] sm:$0xff] %v1583_v46 }
 0x4b3   : > { %2405 = shalt.err (!%p2402_p4)
}
 0x4b4   : > { %s2406_s15 = scalar_lea.hbm %s3173_s11, 4096  ;;  %s2410_s8 = scalar_lea.hbm %s3228_s7, 8192 }
 0x4b5   : > { %p2407_p9 = scmp.ne.s32.totalorder %s3173_s11, %s2406_s15  ;;  %p2411_p8 = scmp.lt.u32.totalorder %s3173_s11, %s3228_s7 }
 0x4b6   : > { %p2412_p13 = scmp.lt.u32.totalorder %s2410_s8, %s2406_s15  ;;  %p2414_p10 = scmp.lt.u32.totalorder %s2406_s15, %s3173_s11 }
 0x4b7   : > { %p2408_p0 = pnand %p2407_p9, %p2671_p5 }
 0x4b8   : > { %p2413_p6 = por %p2412_p13, %p2411_p8 }
 0x4b9   : > { %p2409_p11 = pneg %p2408_p0 }
 0x4ba   : > { %p2415_p3 = por %p2414_p10, %p2413_p6 }
 0x4bc   : > { %p2416_p7 = pnand %p2415_p3, %p2409_p11 }
 0x4be   : > { %2419 = shalt.err (!%p2416_p7)
}
 0x4bf   : > { %s2475_s29 = smov 128   ;;  %s2476_s23 = smov 8  }
 0x4c0   : > { %2043 = dma.vmem_to_hbm [thread:$0]  (%p2671_p5), %s3175_s16, 4096, %s3173_s11, %s1617_s28, %s2475_s29, %s2475_s29, %s2476_s23  }
 0x4c1 PF: > { %s3248_s20 = sld [smem:[#allocation15_spill]]  ;;  %s1645_s30 = sand.u32 1, %s2454_s24  }
 0x4c2   : > { %p3250_p1 = scmp.ge.s32.totalorder %s2466_s27, 2  ;;  %s1646_s9 = scalar_lea.sflag [#allocation4], %s1645_s30 }
 0x4c7   : > { %p3249_p12 = scmp.ne.s32.totalorder %s3248_s20, 0 }
 0x4c9   : > { %p2060_p2 = pnand %p3250_p1, %p3249_p12 }
 0x4cb   : > { %2449 = dma.done.wait (!%p2060_p2), %s1646_s9, 4096  }
 0x4cc   : > { %2451 = vsyncadd (!%p2060_p2), %s1646_s9, 4294963200  ;;  %p22_p4 = scmp.ge.s32.totalorder %s2657_s22, 4   ;;  %s3251_s24 = smov %s2458_s25 }
 0x4cd   : > { %s3252_s25 = smov %s2462_s26  ;;  %s3253_s26 = smov %s2667_s18 }
 0x4ce   : > { %s3254_s27 = smov %s2657_s22  ;;  %24 = sbr.rel (!%p22_p4) target bundleno = 7 (0x7), region = 105 }
 0x4d5   :  { %1651 = vsyncpa [#allocation3], 1 }
 0x4d6   :  { %1653 = vsyncpa [#allocation3 + $0x1], 1 }
 0x4d7   :  { %1654 = vsyncpa [#allocation6], 1 }
 0x4d8   :  { %1655 = vsyncpa [#allocation9], 1 }
 0x4d9   :  { %1656 = vsyncpa [#allocation4], 1 }
 0x4da   :  { %1658 = vsyncpa [#allocation4 + $0x1], 1 }

</bundles_post_ra>
